<compile_context>
chip_gen: v6e
topology: v6e:2x2x1
jax: 0.10.0
libtpu: 0.0.40
codegen_flags: <defaults>
</compile_context>

<pallas_src>
import functools
import math

import jax
import jax.numpy as jnp
from jax import lax
from jax.experimental import pallas as pl
from jax.experimental.pallas import tpu as pltpu

NEG_SLOPE = 0.01                    # nn.LeakyReLU() default
BN_EPS = 1e-5                       # nn.BatchNorm2d default
VMEM_LIMIT = 32 * 1024 * 1024       # explicit scoped-VMEM cap; safe on v7x (64 MiB phys)
FP32_BYTES = 4


def _im2col_into(slab_ref, xp, H, W, C):
    """Scatter the 9 shifted 3x3 taps of a zero-padded (H+2, W+2, C) activation into
    slab_ref (H*W, 9*C): the conv then becomes ONE (M, 9*C) x (9*C, Cout) MXU matmul
    instead of 9 near-empty K=C matmuls (9x fewer MXU issues)."""
    M = H * W
    for t, (dy, dx) in enumerate([(dy, dx) for dy in range(3) for dx in range(3)]):
        # Static slices; reshape only collapses major dims (channel stays minor).
        slab_ref[:, t * C:(t + 1) * C] = xp[dy:dy + H, dx:dx + W, :].reshape(M, C)


def _conv1_stats_kernel(x_ref, w_ref, b_ref, y_ref, st_ref, slab_ref):
    """Pass 1 (one image per grid step): conv1 + bias, plus per-image partial
    sum / sum-of-squares for BatchNorm1's training-mode batch statistics."""
    Hp, Wp, Cin = x_ref.shape
    H, W = Hp - 2, Wp - 2
    Cout = b_ref.shape[-1]

    _im2col_into(slab_ref, x_ref[...], H, W, Cin)
    # bf16 MXU operands, f32 accumulation.
    acc = jnp.dot(slab_ref[...].astype(jnp.bfloat16), w_ref[...],
                  preferred_element_type=jnp.float32)
    acc = acc + b_ref[...]                                      # (H*W, Cout) f32

    st_ref[0:1, :] = jnp.sum(acc, axis=0, keepdims=True)        # partial sum
    st_ref[1:2, :] = jnp.sum(acc * acc, axis=0, keepdims=True)  # partial sum of squares
    y_ref[...] = acc.reshape(H, W, Cout)


def _bn1_drop_conv2_stats_kernel(seed_ref, y1_ref, s1_ref, t1_ref, w2_ref, b2_ref,
                                 y2_ref, st_ref, pad_ref, slab_ref, *, dropout_p):
    """Pass 2 (one image per grid step): BN1 (pre-folded scale/shift from the global
    batch stats) + LeakyReLU + Dropout + conv2 + bias, plus partial stats for BN2."""
    H, W, Cout = y1_ref.shape
    Hp, Wp = H + 2, W + 2
    M = H * W

    h = y1_ref[...].reshape(M, Cout) * s1_ref[...] + t1_ref[...]   # folded BN1 affine
    h = jnp.where(h > 0, h, NEG_SLOPE * h)                         # LeakyReLU(0.01)

    if dropout_p > 0.0:
        # TODO(synk): PyTorch's dropout RNG stream cannot be reproduced bit-exactly;
        # the TPU hardware PRNG gives the same Bernoulli(1-p) keep + 1/(1-p) scaling.
        pltpu.prng_seed(seed_ref[0] + pl.program_id(0))  # per-call seed, per-image stream
        bits = pltpu.bitcast(pltpu.prng_random_bits(h.shape), jnp.uint32)
        thresh = jnp.uint32(min(int(dropout_p * 4294967296.0), 0xFFFFFFFF))
        # Integer-domain keep test (no u32->f32 convert): keep iff bits >= p * 2^32.
        h = jnp.where(bits >= thresh, h * (1.0 / (1.0 - dropout_p)), 0.0)

    # Zero-pad the activation into VMEM scratch: halo only (interior fully
    # overwritten below, so no full-buffer zero + interior rewrite).
    zrow = jnp.zeros((1, Wp, Cout), jnp.float32)
    zcol = jnp.zeros((Hp, 1, Cout), jnp.float32)
    pad_ref[0:1, :, :] = zrow
    pad_ref[Hp - 1:Hp, :, :] = zrow
    pad_ref[:, 0:1, :] = zcol
    pad_ref[:, Wp - 1:Wp, :] = zcol
    pad_ref[1:Hp - 1, 1:Wp - 1, :] = h.reshape(H, W, Cout)

    _im2col_into(slab_ref, pad_ref[...], H, W, Cout)
    acc = jnp.dot(slab_ref[...].astype(jnp.bfloat16), w2_ref[...],
                  preferred_element_type=jnp.float32)
    acc = acc + b2_ref[...]

    st_ref[0:1, :] = jnp.sum(acc, axis=0, keepdims=True)
    st_ref[1:2, :] = jnp.sum(acc * acc, axis=0, keepdims=True)
    y2_ref[...] = acc.reshape(H, W, Cout)


def _bn2_lrelu_kernel(y_ref, s_ref, t_ref, o_ref):
    """Pass 3: BN2 (folded affine) + LeakyReLU on a lane-dense (rows, W*Cout) layout
    (last dim is a multiple of 128 at these shapes -> unmasked full-lane stores)."""
    y = y_ref[...] * s_ref[...] + t_ref[...]
    o_ref[...] = jnp.where(y > 0, y, NEG_SLOPE * y)


def _fold_bn(partial_stats, gamma, beta, count):
    """Reduce per-image (sum, sumsq) partials -> training-mode BN (biased variance,
    eps=1e-5), folded into a single per-channel scale/shift for the next kernel."""
    s = jnp.sum(partial_stats[:, 0, :], axis=0)
    ss = jnp.sum(partial_stats[:, 1, :], axis=0)
    mean = s / count
    var = jnp.maximum(ss / count - mean * mean, 0.0)
    scale = gamma * lax.rsqrt(var + BN_EPS)
    shift = beta - mean * scale
    return scale.astype(jnp.float32), shift.astype(jnp.float32)


def conv_block_forward(x_nchw, params, dropout_p=0.0, seed=0):
    """Forward pass matching ConvBlock(in_ch, out_ch, dropout_p) in training mode.
    Input/output are NCHW like the PyTorch module."""
    w1, b1, g1, bt1, w2, b2, g2, bt2 = params
    N, Cin, H, W = x_nchw.shape
    Cout = w1.shape[0]
    Hp, Wp = H + 2, W + 2
    M = N * H * W

    # NCHW -> NHWC (channels minor) and zero-pad spatially (padding=1) in JAX glue.
    x = jnp.transpose(x_nchw, (0, 2, 3, 1)).astype(jnp.float32)
    x_pad = jnp.pad(x, ((0, 0), (1, 1), (1, 1), (0, 0)))

    # PyTorch OIHW -> im2col weight matrices (9*Cin, Cout): row = tap*Cin + cin,
    # matching the slab layout written by _im2col_into. bf16 for the MXU.
    w1k = jnp.transpose(w1, (2, 3, 1, 0)).reshape(9 * Cin, Cout).astype(jnp.bfloat16)
    w2k = jnp.transpose(w2, (2, 3, 1, 0)).reshape(9 * Cout, Cout).astype(jnp.bfloat16)
    b1r = b1.reshape(1, Cout).astype(jnp.float32)
    b2r = b2.reshape(1, Cout).astype(jnp.float32)

    cparams = pltpu.CompilerParams(dimension_semantics=("parallel",),
                                   vmem_limit_bytes=VMEM_LIMIT)

    # -------- pass 1: conv1 + bias + partial BN1 stats (grid over images) ----------
    y1, st1 = pl.pallas_call(
        _conv1_stats_kernel,
        out_shape=(jax.ShapeDtypeStruct((N, H, W, Cout), jnp.float32),
                   jax.ShapeDtypeStruct((N, 2, Cout), jnp.float32)),
        grid_spec=pltpu.PrefetchScalarGridSpec(
            num_scalar_prefetch=0,
            grid=(N,),
            in_specs=[
                pl.BlockSpec((None, Hp, Wp, Cin), lambda b: (b, 0, 0, 0)),
                pl.BlockSpec((9 * Cin, Cout), lambda b: (0, 0)),
                pl.BlockSpec((1, Cout), lambda b: (0, 0)),
            ],
            out_specs=(
                pl.BlockSpec((None, H, W, Cout), lambda b: (b, 0, 0, 0)),
                pl.BlockSpec((None, 2, Cout), lambda b: (b, 0, 0)),
            ),
            scratch_shapes=[pltpu.VMEM((H * W, 9 * Cin), jnp.float32)],
        ),
        compiler_params=cparams,
        cost_estimate=pl.CostEstimate(
            flops=2 * M * 9 * Cin * Cout,
            transcendentals=0,
            bytes_accessed=FP32_BYTES * (N * Hp * Wp * Cin + M * Cout)
                           + 2 * 9 * Cin * Cout),
    )(x_pad, w1k, b1r)

    scale1, shift1 = _fold_bn(st1, g1, bt1, M)

    # -------- pass 2: BN1 + LeakyReLU + Dropout + conv2 + partial BN2 stats --------
    seed_arr = jnp.asarray([seed], dtype=jnp.int32)
    kernel2 = functools.partial(_bn1_drop_conv2_stats_kernel,
                                dropout_p=float(dropout_p))
    y2, st2 = pl.pallas_call(
        kernel2,
        out_shape=(jax.ShapeDtypeStruct((N, H, W, Cout), jnp.float32),
                   jax.ShapeDtypeStruct((N, 2, Cout), jnp.float32)),
        grid_spec=pltpu.PrefetchScalarGridSpec(
            num_scalar_prefetch=1,                       # dropout seed lives in SMEM
            grid=(N,),
            in_specs=[
                pl.BlockSpec((None, H, W, Cout), lambda b, sd: (b, 0, 0, 0)),
                pl.BlockSpec((1, Cout), lambda b, sd: (0, 0)),
                pl.BlockSpec((1, Cout), lambda b, sd: (0, 0)),
                pl.BlockSpec((9 * Cout, Cout), lambda b, sd: (0, 0)),
                pl.BlockSpec((1, Cout), lambda b, sd: (0, 0)),
            ],
            out_specs=(
                pl.BlockSpec((None, H, W, Cout), lambda b, sd: (b, 0, 0, 0)),
                pl.BlockSpec((None, 2, Cout), lambda b, sd: (b, 0, 0)),
            ),
            scratch_shapes=[pltpu.VMEM((Hp, Wp, Cout), jnp.float32),
                            pltpu.VMEM((H * W, 9 * Cout), jnp.float32)],
        ),
        compiler_params=cparams,
        cost_estimate=pl.CostEstimate(
            flops=2 * M * 9 * Cout * Cout + 6 * M * Cout,
            transcendentals=0,
            bytes_accessed=FP32_BYTES * 2 * M * Cout + 2 * 9 * Cout * Cout),
    )(seed_arr, y1, scale1.reshape(1, Cout), shift1.reshape(1, Cout), w2k, b2r)

    scale2, shift2 = _fold_bn(st2, g2, bt2, M)

    # -------- pass 3: BN2 + LeakyReLU on a lane-dense (N*H, W*Cout) layout ---------
    # (N,H,W,C) row-major == (N*H, W*C): this reshape is a free bitcast outside the
    # kernel and gives the kernel last-dim = W*Cout (a multiple of 128 here).
    y2d = y2.reshape(N * H, W * Cout)
    s2t = jnp.tile(scale2, W).reshape(1, W * Cout)   # per-channel affine tiled to lanes
    t2t = jnp.tile(shift2, W).reshape(1, W * Cout)
    out2d = pl.pallas_call(
        _bn2_lrelu_kernel,
        out_shape=jax.ShapeDtypeStruct((N * H, W * Cout), jnp.float32),
        grid_spec=pltpu.PrefetchScalarGridSpec(
            num_scalar_prefetch=0,
            grid=(N,),
            in_specs=[
                pl.BlockSpec((H, W * Cout), lambda b: (b, 0)),
                pl.BlockSpec((1, W * Cout), lambda b: (0, 0)),
                pl.BlockSpec((1, W * Cout), lambda b: (0, 0)),
            ],
            out_specs=pl.BlockSpec((H, W * Cout), lambda b: (b, 0)),
        ),
        compiler_params=cparams,
        cost_estimate=pl.CostEstimate(
            flops=3 * M * Cout,
            transcendentals=0,
            bytes_accessed=FP32_BYTES * 2 * M * Cout),
    )(y2d, s2t, t2t)

    y_nhwc = out2d.reshape(N, H, W, Cout)
    return jnp.transpose(y_nhwc, (0, 3, 1, 2))       # back to NCHW


def ref_forward(x, params, dropout_p=0.0):
    """Pure-JAX reference mirroring ConvBlock in training mode. Conv operands are
    rounded to bf16 (f32 accumulation) to match the kernel's MXU precision;
    dropout_p is assumed 0 for the deterministic check."""
    w1, b1, g1, bt1, w2, b2, g2, bt2 = params

    def conv(x, w, b):
        y = lax.conv_general_dilated(
            x.astype(jnp.bfloat16), w.astype(jnp.bfloat16), (1, 1), 'SAME',
            dimension_numbers=('NCHW', 'OIHW', 'NCHW'),
            preferred_element_type=jnp.float32)
        return y + b[None, :, None, None]

    def bn_lrelu(y, g, bt):
        mean = y.mean(axis=(0, 2, 3), keepdims=True)
        var = ((y - mean) ** 2).mean(axis=(0, 2, 3), keepdims=True)
        y = (y - mean) / jnp.sqrt(var + BN_EPS) * g[None, :, None, None] \
            + bt[None, :, None, None]
        return jnp.where(y > 0, y, NEG_SLOPE * y)

    h = bn_lrelu(conv(x, w1, b1), g1, bt1)
    return bn_lrelu(conv(h, w2, b2), g2, bt2)


if __name__ == "__main__":
    N, Cin, Cout, H, W = 2, 4, 8, 16, 16
    dropout_p = 0.0  # identity dropout so the kernel is deterministically checkable

    key = jax.random.PRNGKey(0)
    ks = jax.random.split(key, 9)
    bound1 = 1.0 / math.sqrt(Cin * 9)
    bound2 = 1.0 / math.sqrt(Cout * 9)
    w1 = jax.random.uniform(ks[0], (Cout, Cin, 3, 3), jnp.float32, -bound1, bound1)
    b1 = jax.random.uniform(ks[1], (Cout,), jnp.float32, -bound1, bound1)
    g1 = 1.0 + 0.1 * jax.random.normal(ks[2], (Cout,), jnp.float32)
    bt1 = 0.1 * jax.random.normal(ks[3], (Cout,), jnp.float32)
    w2 = jax.random.uniform(ks[4], (Cout, Cout, 3, 3), jnp.float32, -bound2, bound2)
    b2 = jax.random.uniform(ks[5], (Cout,), jnp.float32, -bound2, bound2)
    g2 = 1.0 + 0.1 * jax.random.normal(ks[6], (Cout,), jnp.float32)
    bt2 = 0.1 * jax.random.normal(ks[7], (Cout,), jnp.float32)
    x = jax.random.normal(ks[8], (N, Cin, H, W), jnp.float32)
    params = (w1, b1, g1, bt1, w2, b2, g2, bt2)

    y = conv_block_forward(x, params, dropout_p)
    y = jax.block_until_ready(y)

    y_ref = ref_forward(x, params, dropout_p)
    assert y.shape == (N, Cout, H, W)
    max_err = float(jnp.max(jnp.abs(y - y_ref)))
    assert jnp.allclose(y, y_ref, atol=2e-2, rtol=2e-2), max_err
    print("KERNEL_OK")
</pallas_src>

<mosaic_0001>
module attributes {stable_mosaic.version = 11 : i64} {
  func.func @_conv1_stats_kernel(%arg0: i32, %arg1: memref<1x18x18x4xf32, #tpu.memory_space<vmem>>, %arg2: memref<36x8xbf16, #tpu.memory_space<vmem>>, %arg3: memref<1x8xf32, #tpu.memory_space<vmem>>, %arg4: memref<1x16x16x8xf32, #tpu.memory_space<vmem>>, %arg5: memref<1x2x8xf32, #tpu.memory_space<vmem>>, %arg6: memref<256x36xf32, #tpu.memory_space<vmem>>) attributes {dimension_semantics = [#tpu.dimension_semantics<parallel>], iteration_bounds = array<i64: 2>, scalar_prefetch = 0 : i64, scratch_operands = 1 : i64, tpu.core_type = #tpu.core_type<tc>, window_params = [{transform_indices = @transform_0, window_bounds = array<i64: 1, 18, 18, 4>}, {pipeline_mode = #tpu.pipeline_mode<synchronous>, transform_indices = @transform_1, window_bounds = array<i64: 36, 8>}, {pipeline_mode = #tpu.pipeline_mode<synchronous>, transform_indices = @transform_2, window_bounds = array<i64: 1, 8>}, {transform_indices = @transform_3, window_bounds = array<i64: 1, 16, 16, 8>}, {transform_indices = @transform_4, window_bounds = array<i64: 1, 2, 8>}]} {
    %c0 = arith.constant 0 : index
    %c0_0 = arith.constant 0 : index
    %c0_1 = arith.constant 0 : index
    %c0_2 = arith.constant 0 : index
    %0 = vector.load %arg1[%c0, %c0_0, %c0_1, %c0_2] : memref<1x18x18x4xf32, #tpu.memory_space<vmem>>, vector<1x18x18x4xf32>
    %1 = vector.shape_cast %0 : vector<1x18x18x4xf32> to vector<18x18x4xf32>
    %2 = vector.extract_strided_slice %1 {offsets = [0, 0, 0], sizes = [16, 16, 4], strides = [1, 1, 1]} : vector<18x18x4xf32> to vector<16x16x4xf32>
    %3 = vector.shape_cast %2 : vector<16x16x4xf32> to vector<256x4xf32>
    %c0_3 = arith.constant 0 : index
    %c0_4 = arith.constant 0 : index
    %4 = vector.load %arg6[%c0_3, %c0_4] : memref<256x36xf32, #tpu.memory_space<vmem>>, vector<256x4xf32>
    tpu.vector_store %arg6[%c0_3, %c0_4], %3 {strides = array<i32>} : memref<256x36xf32, #tpu.memory_space<vmem>>, vector<256x4xf32>,
    %5 = vector.extract_strided_slice %1 {offsets = [0, 1, 0], sizes = [16, 16, 4], strides = [1, 1, 1]} : vector<18x18x4xf32> to vector<16x16x4xf32>
    %6 = vector.shape_cast %5 : vector<16x16x4xf32> to vector<256x4xf32>
    %c0_5 = arith.constant 0 : index
    %c4 = arith.constant 4 : index
    %7 = vector.load %arg6[%c0_5, %c4] : memref<256x36xf32, #tpu.memory_space<vmem>>, vector<256x4xf32>
    tpu.vector_store %arg6[%c0_5, %c4], %6 {strides = array<i32>} : memref<256x36xf32, #tpu.memory_space<vmem>>, vector<256x4xf32>,
    %8 = vector.extract_strided_slice %1 {offsets = [0, 2, 0], sizes = [16, 16, 4], strides = [1, 1, 1]} : vector<18x18x4xf32> to vector<16x16x4xf32>
    %9 = vector.shape_cast %8 : vector<16x16x4xf32> to vector<256x4xf32>
    %c0_6 = arith.constant 0 : index
    %c8 = arith.constant 8 : index
    %10 = vector.load %arg6[%c0_6, %c8] : memref<256x36xf32, #tpu.memory_space<vmem>>, vector<256x4xf32>
    tpu.vector_store %arg6[%c0_6, %c8], %9 {strides = array<i32>} : memref<256x36xf32, #tpu.memory_space<vmem>>, vector<256x4xf32>,
    %11 = vector.extract_strided_slice %1 {offsets = [1, 0, 0], sizes = [16, 16, 4], strides = [1, 1, 1]} : vector<18x18x4xf32> to vector<16x16x4xf32>
    %12 = vector.shape_cast %11 : vector<16x16x4xf32> to vector<256x4xf32>
    %c0_7 = arith.constant 0 : index
    %c12 = arith.constant 12 : index
    %13 = vector.load %arg6[%c0_7, %c12] : memref<256x36xf32, #tpu.memory_space<vmem>>, vector<256x4xf32>
    tpu.vector_store %arg6[%c0_7, %c12], %12 {strides = array<i32>} : memref<256x36xf32, #tpu.memory_space<vmem>>, vector<256x4xf32>,
    %14 = vector.extract_strided_slice %1 {offsets = [1, 1, 0], sizes = [16, 16, 4], strides = [1, 1, 1]} : vector<18x18x4xf32> to vector<16x16x4xf32>
    %15 = vector.shape_cast %14 : vector<16x16x4xf32> to vector<256x4xf32>
    %c0_8 = arith.constant 0 : index
    %c16 = arith.constant 16 : index
    %16 = vector.load %arg6[%c0_8, %c16] : memref<256x36xf32, #tpu.memory_space<vmem>>, vector<256x4xf32>
    tpu.vector_store %arg6[%c0_8, %c16], %15 {strides = array<i32>} : memref<256x36xf32, #tpu.memory_space<vmem>>, vector<256x4xf32>,
    %17 = vector.extract_strided_slice %1 {offsets = [1, 2, 0], sizes = [16, 16, 4], strides = [1, 1, 1]} : vector<18x18x4xf32> to vector<16x16x4xf32>
    %18 = vector.shape_cast %17 : vector<16x16x4xf32> to vector<256x4xf32>
    %c0_9 = arith.constant 0 : index
    %c20 = arith.constant 20 : index
    %19 = vector.load %arg6[%c0_9, %c20] : memref<256x36xf32, #tpu.memory_space<vmem>>, vector<256x4xf32>
    tpu.vector_store %arg6[%c0_9, %c20], %18 {strides = array<i32>} : memref<256x36xf32, #tpu.memory_space<vmem>>, vector<256x4xf32>,
    %20 = vector.extract_strided_slice %1 {offsets = [2, 0, 0], sizes = [16, 16, 4], strides = [1, 1, 1]} : vector<18x18x4xf32> to vector<16x16x4xf32>
    %21 = vector.shape_cast %20 : vector<16x16x4xf32> to vector<256x4xf32>
    %c0_10 = arith.constant 0 : index
    %c24 = arith.constant 24 : index
    %22 = vector.load %arg6[%c0_10, %c24] : memref<256x36xf32, #tpu.memory_space<vmem>>, vector<256x4xf32>
    tpu.vector_store %arg6[%c0_10, %c24], %21 {strides = array<i32>} : memref<256x36xf32, #tpu.memory_space<vmem>>, vector<256x4xf32>,
    %23 = vector.extract_strided_slice %1 {offsets = [2, 1, 0], sizes = [16, 16, 4], strides = [1, 1, 1]} : vector<18x18x4xf32> to vector<16x16x4xf32>
    %24 = vector.shape_cast %23 : vector<16x16x4xf32> to vector<256x4xf32>
    %c0_11 = arith.constant 0 : index
    %c28 = arith.constant 28 : index
    %25 = vector.load %arg6[%c0_11, %c28] : memref<256x36xf32, #tpu.memory_space<vmem>>, vector<256x4xf32>
    tpu.vector_store %arg6[%c0_11, %c28], %24 {strides = array<i32>} : memref<256x36xf32, #tpu.memory_space<vmem>>, vector<256x4xf32>,
    %26 = vector.extract_strided_slice %1 {offsets = [2, 2, 0], sizes = [16, 16, 4], strides = [1, 1, 1]} : vector<18x18x4xf32> to vector<16x16x4xf32>
    %27 = vector.shape_cast %26 : vector<16x16x4xf32> to vector<256x4xf32>
    %c0_12 = arith.constant 0 : index
    %c32 = arith.constant 32 : index
    %28 = vector.load %arg6[%c0_12, %c32] : memref<256x36xf32, #tpu.memory_space<vmem>>, vector<256x4xf32>
    tpu.vector_store %arg6[%c0_12, %c32], %27 {strides = array<i32>} : memref<256x36xf32, #tpu.memory_space<vmem>>, vector<256x4xf32>,
    %c0_13 = arith.constant 0 : index
    %c0_14 = arith.constant 0 : index
    %29 = vector.load %arg6[%c0_13, %c0_14] : memref<256x36xf32, #tpu.memory_space<vmem>>, vector<256x36xf32>
    %30 = arith.truncf %29 : vector<256x36xf32> to vector<256x36xbf16>
    %c0_15 = arith.constant 0 : index
    %c0_16 = arith.constant 0 : index
    %31 = vector.load %arg2[%c0_15, %c0_16] : memref<36x8xbf16, #tpu.memory_space<vmem>>, vector<36x8xbf16>
    %cst = arith.constant dense<0.000000e+00> : vector<256x8xf32>
    %32 = tpu.matmul %30, %31, %cst {dimension_numbers = #tpu.dot_dimension_numbers<[1], [0], [0], [1], [0, 0, 1, 1], [], []>} : vector<256x36xbf16>, vector<36x8xbf16>, vector<256x8xf32> -> vector<256x8xf32>
    %c0_17 = arith.constant 0 : index
    %c0_18 = arith.constant 0 : index
    %33 = vector.load %arg3[%c0_17, %c0_18] : memref<1x8xf32, #tpu.memory_space<vmem>>, vector<1x8xf32>
    %34 = vector.broadcast %33 : vector<1x8xf32> to vector<256x8xf32>
    %35 = arith.addf %32, %34 : vector<256x8xf32>
    %cst_19 = arith.constant dense<0.000000e+00> : vector<8xf32>
    %36 = vector.multi_reduction <add>, %35, %cst_19 [0] : vector<256x8xf32> to vector<8xf32>
    %37 = vector.shape_cast %36 : vector<8xf32> to vector<1x8xf32>
    %c0_20 = arith.constant 0 : index
    %c0_21 = arith.constant 0 : index
    %c0_22 = arith.constant 0 : index
    %38 = vector.load %arg5[%c0_20, %c0_21, %c0_22] : memref<1x2x8xf32, #tpu.memory_space<vmem>>, vector<1x1x8xf32>
    %39 = vector.shape_cast %38 : vector<1x1x8xf32> to vector<1x8xf32>
    %40 = vector.shape_cast %37 : vector<1x8xf32> to vector<1x1x8xf32>
    tpu.vector_store %arg5[%c0_20, %c0_21, %c0_22], %40 {strides = array<i32>} : memref<1x2x8xf32, #tpu.memory_space<vmem>>, vector<1x1x8xf32>,
    %41 = arith.mulf %35, %35 : vector<256x8xf32>
    %cst_23 = arith.constant dense<0.000000e+00> : vector<8xf32>
    %42 = vector.multi_reduction <add>, %41, %cst_23 [0] : vector<256x8xf32> to vector<8xf32>
    %43 = vector.shape_cast %42 : vector<8xf32> to vector<1x8xf32>
    %c0_24 = arith.constant 0 : index
    %c1 = arith.constant 1 : index
    %c0_25 = arith.constant 0 : index
    %44 = vector.load %arg5[%c0_24, %c1, %c0_25] : memref<1x2x8xf32, #tpu.memory_space<vmem>>, vector<1x1x8xf32>
    %45 = vector.shape_cast %44 : vector<1x1x8xf32> to vector<1x8xf32>
    %46 = vector.shape_cast %43 : vector<1x8xf32> to vector<1x1x8xf32>
    tpu.vector_store %arg5[%c0_24, %c1, %c0_25], %46 {strides = array<i32>} : memref<1x2x8xf32, #tpu.memory_space<vmem>>, vector<1x1x8xf32>,
    %47 = vector.shape_cast %35 : vector<256x8xf32> to vector<16x16x8xf32>
    %c0_26 = arith.constant 0 : index
    %c0_27 = arith.constant 0 : index
    %c0_28 = arith.constant 0 : index
    %c0_29 = arith.constant 0 : index
    %48 = vector.load %arg4[%c0_26, %c0_27, %c0_28, %c0_29] : memref<1x16x16x8xf32, #tpu.memory_space<vmem>>, vector<1x16x16x8xf32>
    %49 = vector.shape_cast %48 : vector<1x16x16x8xf32> to vector<16x16x8xf32>
    %50 = vector.shape_cast %47 : vector<16x16x8xf32> to vector<1x16x16x8xf32>
    tpu.vector_store %arg4[%c0_26, %c0_27, %c0_28, %c0_29], %50 {strides = array<i32>} : memref<1x16x16x8xf32, #tpu.memory_space<vmem>>, vector<1x16x16x8xf32>,
    return
  }
  func.func @transform_0(%arg0: i32) -> (i32, i32, i32, i32) {
    %c0_i32 = arith.constant 0 : i32
    %c0_i32_0 = arith.constant 0 : i32
    %c0_i32_1 = arith.constant 0 : i32
    %c0_i32_2 = arith.constant 0 : i32
    return %arg0, %c0_i32, %c0_i32_0, %c0_i32_1 : i32, i32, i32, i32
  }
  func.func @transform_1(%arg0: i32) -> (i32, i32) {
    %c0_i32 = arith.constant 0 : i32
    %c0_i32_0 = arith.constant 0 : i32
    %c0_i32_1 = arith.constant 0 : i32
    return %c0_i32, %c0_i32_0 : i32, i32
  }
  func.func @transform_2(%arg0: i32) -> (i32, i32) {
    %c0_i32 = arith.constant 0 : i32
    %c0_i32_0 = arith.constant 0 : i32
    %c0_i32_1 = arith.constant 0 : i32
    return %c0_i32, %c0_i32_0 : i32, i32
  }
  func.func @transform_3(%arg0: i32) -> (i32, i32, i32, i32) {
    %c0_i32 = arith.constant 0 : i32
    %c0_i32_0 = arith.constant 0 : i32
    %c0_i32_1 = arith.constant 0 : i32
    %c0_i32_2 = arith.constant 0 : i32
    return %arg0, %c0_i32, %c0_i32_0, %c0_i32_1 : i32, i32, i32, i32
  }
  func.func @transform_4(%arg0: i32) -> (i32, i32, i32) {
    %c0_i32 = arith.constant 0 : i32
    %c0_i32_0 = arith.constant 0 : i32
    %c0_i32_1 = arith.constant 0 : i32
    return %arg0, %c0_i32, %c0_i32_0 : i32, i32, i32
  }
}

</mosaic_0001>

<bundles_post_ra>
// kernel: tpu_custom_call.1
= control target key start
LH: loop header
LB: loop body
LE: loop exit
PB: predicated region body
PF: predicated region fallthrough
CT: control target
= control target key end

     0   :  { %10 = vsyncpa [#allocation4], 0  ;;  %s3947_s0 = inlined_call_operand.vmem [shape: f32[2,18,18,4], index: 0, kind: input, shape index: {}]   ;;  %s3948_s1 = inlined_call_operand.vmem [shape: bf16[36,8], index: 1, kind: input, shape index: {}]   ;;  %s3949_s2 = inlined_call_operand.vmem [shape: f32[1,8], index: 2, kind: input, shape index: {}]   ;;  %s3950_s3 = inlined_call_operand.vmem [shape: f32[2,16,16,8], index: 3, kind: output, shape index: {0}]   ;;  %s3951_s4 = inlined_call_operand.hbm [shape: f32[2,2,8], index: 4, kind: output, shape index: {1}]  }
   0x1   :  { %12 = vsyncpa [#allocation4 + $0x1], 0  ;;  %s2411_s15 = smov 0   ;;  %s2413_s16 = smov 0  }
   0x2   :  { %s2415_s17 = smov 0   ;;  %s2417_s18 = smov 0  }
   0x3 LB: > { %s2432_s19 = sadd.s32 4294967295, %s2375_s18   ;;  %s2166_s20 = sadd.s32 4294967294, %s2375_s18   ;;  %s2375_s18 = sphi %s2417_s18, %s4089_s18   ;;  %s2371_s17 = sphi %s2415_s17, %s4088_s17   ;;  %s2367_s16 = sphi %s2413_s16, %s4087_s16   ;;  %s2363_s15 = sphi %s2411_s15, %s4086_s15  }
   0x4   : > { %s2436_s21 = sadd.s32 1, %s2375_s18   ;;  %s119_s22 = sadd.s32 1, %s2371_s17 }
   0x5   : > { %s116_s23 = ssub.s32 %s2375_s18, %s2436_s21  ;;  %p129_p0 = scmp.ne.s32.totalorder %s2371_s17, %s2367_s16 }
   0x6   : > { %p117_p1 = scmp.eq.s32.totalorder %s116_s23, 0  ;;  %p130_p2 = scmp.eq.s32.totalorder %s2432_s19, 1 }
   0x7   : > { %p135_p3 = scmp.ne.s32.totalorder %s2367_s16, %s2363_s15  ;;  %p136_p4 = scmp.eq.s32.totalorder %s2166_s20, 1 }
   0x8   : > { %s2447_s24 = scalar_select %p117_p1, %s2371_s17, %s119_s22  }
   0x9   : > { %p2449_p5 = por %p130_p2, %p129_p0  ;;  %p2453_p6 = por %p136_p4, %p135_p3 }
   0xa   : > { %p2169_p7 = scmp.ge.s32.totalorder %s2375_s18, 1  ;;  %p168_p8 = scmp.lt.s32.totalorder %s2375_s18, 3 }
   0xc   : > { %p169_p9 = pnand %p2169_p7, %p168_p8 }
   0xe   : > { %172 = sbr.rel (%p169_p9) target bundleno = 899 (0x383), region = 32 }
  0x13   : > { %p199_p10 = scmp.lt.s32.totalorder %s2432_s19, 1  ;;  %vm264_vm0 = vcmask 31744   ;;  %vm345_vm1 = vcmask 1046528   ;;  %s2377_s6 = smov 4   ;;  %vm555_vm2 = vcmask 1045504   ;;  %vm522_vm3 = vcmask 64544  }
  0x14   : > { %s2378_s7 = smov 8   ;;  %s2379_s8 = smov 12   ;;  %vm732_vm4 = vcmask 97344   ;;  %vm1689_vm5 = vcmask 1041408   ;;  %vm863_vm6 = vcmask 130144   ;;  %vm998_vm7 = vcmask 162944  }
  0x15   : > { %s2461_s27 = scalar_select %p199_p10, %s2432_s19, 1  ;;  %vm1132_vm8 = vcmask 195744   ;;  %vm1263_vm9 = vcmask 228544   ;;  %vm1398_vm10 = vcmask 261344   ;;  %vm1532_vm11 = vcmask 294144  }
  0x16   : > { %s2380_s9 = smov 16   ;;  %s2381_s10 = smov 20   ;;  %vm1640_vm12 = vcmask 293888   ;;  %vm1854_vm13 = vcmask 64512   ;;  %vm1924_vm14 = vcmask 57344  }
  0x17   : > { %s2264_s28 = smul.u32 432, %s2461_s27  ;;  %s2382_s11 = smov 24  }
  0x18   : > { %s2383_s14 = smov 28   ;;  %s2384_s29 = smov 32  }
  0x19   : > { %s2467_s5 = scalar_lea.vmem %s3947_s0, %s2264_s28  ;;  %s2198_s30 = sshll.u32 %s2461_s27, 8 }
  0x1a   : > { %v2470_v0 = vld [vmem:[%s2467_s5 + $0x18] sm:$0xff]  ;;  %v2473_v1 = vld [vmem:[%s2467_s5 + $0x20] sm:$0xff]  ;;  %v2481_v5 = vld [vmem:[%s2467_s5 + $0x8] sm:$0xff]  ;;  %s196_s27 = sand.u32 1, %s2367_s16  }
  0x1b   : > { %v2476_v2 = vld [vmem:[%s2467_s5] sm:$0xff]  ;;  %v351_v3 = vrot.slane %v2470_v0, 1  ;;  %v352_v4 = vrot.slane %v2473_v1, 1  ;;  %v2485_v7 = vld [vmem:[%s2467_s5 + $0x28] sm:$0x3]  ;;  %267 = vst.msk [vmem:[#allocation2 + $0x10] sm:$0xff] %vm264_vm0, %v2470_v0 }
  0x1c   : > { %v346_v6 = vrot.slane %v2476_v2, 1  ;;  %265 = vst.msk [vmem:[#allocation2] sm:$0xff] %vm264_vm0, %v2476_v2  ;;  %268 = vst.msk [vmem:[#allocation2 + $0x18] sm:$0xff] %vm264_vm0, %v2473_v1  ;;  %v347_v8 = vrot.slane %v2481_v5, 1  ;;  %v354_v9 = vrot.slane %v2485_v7, 1  ;;  %v2499_v11 = vld [vmem:[%s2467_s5 + $0x38] sm:$0xff] }
  0x1d   : > { %v2496_v10 = vld [vmem:[%s2467_s5 + $0x10] sm:$0x3]  ;;  %266 = vst.msk [vmem:[#allocation2 + $0x8] sm:$0xff] %vm264_vm0, %v2481_v5  ;;  %v2507_v13 = vsel %vm345_vm1, %v351_v3, %v352_v4  ;;  %v2511_v15 = vld [vmem:[%s2467_s5 + $0x40] sm:$0x3]  ;;  %270 = vst.msk [vmem:[#allocation2 + $0x28] sm:$0xff] %vm264_vm0, %v2499_v11 }
  0x1e   : > { %v2502_v12 = vld [vmem:[%s2467_s5 + $0x30] sm:$0xff]  ;;  %v349_v14 = vrot.slane %v2496_v10, 1  ;;  %430 = vrot.lane.b32.xlu1 %v2507_v13, %s2377_s6  ;;  %v348_v17 = vsel %vm345_vm1, %v346_v6, %v347_v8  ;;  %v2524_v18 = vld [vmem:[%s2467_s5 + $0x48] sm:$0xff]  ;;  %v2533_v20 = vsel %vm345_vm1, %v352_v4, %v354_v9  ;;  %v357_v21 = vrot.slane %v2499_v11, 1  ;;  %v2538_v23 = vld [vmem:[%s2467_s5 + $0x60] sm:$0xff]  ;;  %s2066_s23 = scalar_lea.sflag [#allocation4], %s196_s27 }
  0x1f   : > { %v2514_v16 = vld [vmem:[%s2467_s5 + $0x50] sm:$0xff]  ;;  %269 = vst.msk [vmem:[#allocation2 + $0x20] sm:$0xff] %vm264_vm0, %v2502_v12  ;;  %v2527_v19 = vld [vmem:[%s2467_s5 + $0x68] sm:$0xff]  ;;  %426 = vrot.lane.b32.xlu0 %v348_v17, %s2377_s6  ;;  %v359_v22 = vrot.slane %v2511_v15, 1  ;;  %v2541_v24 = vld [vmem:[%s2467_s5 + $0x80] sm:$0xff]  ;;  %v356_v26 = vrot.slane %v2502_v12, 1 }
  0x20   : > { %272 = vst.msk [vmem:[#allocation2 + $0x38] sm:$0xff] %vm264_vm0, %v2514_v16  ;;  %271 = vst.msk [vmem:[#allocation2 + $0x30] sm:$0xff] %vm264_vm0, %v2524_v18  ;;  %v350_v25 = vsel %vm345_vm1, %v347_v8, %v349_v14  ;;  %v2550_v27 = vld [vmem:[%s2467_s5 + $0x58] sm:$0x3]  ;;  %v2563_v30 = vld [vmem:[%s2467_s5 + $0x90] sm:$0xff]  ;;  %v362_v34 = vrot.slane %v2514_v16, 1 }
  0x21   : > { %274 = vst.msk [vmem:[#allocation2 + $0x48] sm:$0xff] %vm264_vm0, %v2527_v19  ;;  %v2553_v28 = vld [vmem:[%s2467_s5 + $0x78] sm:$0xff]  ;;  %273 = vst.msk [vmem:[#allocation2 + $0x40] sm:$0xff] %vm264_vm0, %v2538_v23  ;;  %v2570_v31 = vld [vmem:[%s2467_s5 + $0xb0] sm:$0xff]  ;;  %v2581_v33 = vsel %vm345_vm1, %v357_v21, %v359_v22  ;;  %v364_v35 = vrot.slane %v2550_v27, 1  ;;  %v2596_v38 = vsel %vm345_vm1, %v356_v26, %v357_v21  ;;  %v361_v39 = vrot.slane %v2524_v18, 1 }
  0x22   : > { %276 = vst.msk [vmem:[#allocation2 + $0x58] sm:$0xff] %vm264_vm0, %v2541_v24  ;;  %v2560_v29 = vld [vmem:[%s2467_s5 + $0x98] sm:$0xff]  ;;  %275 = vst.msk [vmem:[#allocation2 + $0x50] sm:$0xff] %vm264_vm0, %v2553_v28  ;;  %432 = vrot.lane.b32.xlu1 %v2533_v20, %s2377_s6  ;;  %v2573_v32 = vld [vmem:[%s2467_s5 + $0xa8] sm:$0xff]  ;;  %v367_v48 = vrot.slane %v2527_v19, 1  ;;  %v366_v53 = vrot.slane %v2538_v23, 1 }
  0x23   : > { %277 = vst.msk [vmem:[#allocation2 + $0x60] sm:$0xff] %vm264_vm0, %v2563_v30  ;;  %278 = vst.msk [vmem:[#allocation2 + $0x68] sm:$0xff] %vm264_vm0, %v2560_v29  ;;  %428 = vrot.lane.b32.xlu0 %v350_v25, %s2377_s6  ;;  %v2586_v36 = vld [vmem:[%s2467_s5 + $0x70] sm:$0x3]  ;;  %v2589_v37 = vld [vmem:[%s2467_s5 + $0xc8] sm:$0xff]  ;;  %v2637_v47 = vsel %vm345_vm1, %v362_v34, %v364_v35  ;;  %v2652_v52 = vsel %vm345_vm1, %v361_v39, %v362_v34  ;;  %v372_v60 = vrot.slane %v2541_v24, 1 }
  0x24   : > { %279 = vst.msk [vmem:[#allocation2 + $0x70] sm:$0xff] %vm264_vm0, %v2573_v32  ;;  %280 = vst.msk [vmem:[#allocation2 + $0x78] sm:$0xff] %vm264_vm0, %v2570_v31  ;;  %v2600_v40 = vld [vmem:[%s2467_s5 + $0xc0] sm:$0xff]  ;;  %v2606_v42 = vld [vmem:[%s2467_s5 + $0xd8] sm:$0xff]  ;;  %v369_v49 = vrot.slane %v2586_v36, 1  ;;  %v2698_v3 = vsel %vm345_vm1, %v366_v53, %v367_v48  ;;  %v371_v4 = vrot.slane %v2553_v28, 1 }
  0x25   : > { %v2603_v41 = vld [vmem:[%s2467_s5 + $0xe0] sm:$0xff]  ;;  %282 = vst.msk [vmem:[#allocation2 + $0x88] sm:$0xff] %vm264_vm0, %v2589_v37  ;;  %v2611_v43 = vld [vmem:[%s2467_s5 + $0xf8] sm:$0xff]  ;;  %v2614_v44 = vld [vmem:[%s2467_s5 + $0xf0] sm:$0xff]  ;;  %v377_v9 = vrot.slane %v2560_v29, 1  ;;  %v376_v21 = vrot.slane %v2563_v30, 1 }
  0x26   : > { %4020 = vst [vmem:[#allocation6_spill] sm:$0xff] %v2603_v41  ;;  %4021 = vst [vmem:[#allocation7_spill] sm:$0xff] %v2611_v43  ;;  %436 = vrot.lane.b32.xlu1 %v2581_v33, %s2377_s6  ;;  %v2625_v45 = vld [vmem:[%s2467_s5 + $0x110] sm:$0xff]  ;;  %v2628_v46 = vld [vmem:[%s2467_s5 + $0x108] sm:$0xff]  ;;  %v2683_v59 = vsel %vm345_vm1, %v367_v48, %v369_v49  ;;  %v2718_v17 = vsel %vm345_vm1, %v371_v4, %v372_v60  ;;  %v382_v26 = vrot.slane %v2570_v31, 1  ;;  %v381_v39 = vrot.slane %v2573_v32, 1 }
  0x27   : > { %281 = vst.msk [vmem:[#allocation2 + $0x80] sm:$0xff] %vm264_vm0, %v2600_v40  ;;  %283 = vst.msk [vmem:[#allocation2 + $0x90] sm:$0xff] %vm264_vm0, %v2606_v42  ;;  %434 = vrot.lane.b32.xlu0 %v2596_v38, %s2377_s6  ;;  %v2642_v50 = vld [vmem:[%s2467_s5 + $0x128] sm:$0xff]  ;;  %v2645_v51 = vld [vmem:[%s2467_s5 + $0x120] sm:$0xff]  ;;  %v2734_v35 = vsel %vm345_vm1, %v376_v21, %v377_v9  ;;  %v387_v53 = vrot.slane %v2589_v37, 1  ;;  %v386_v4 = vrot.slane %v2600_v40, 1 }
  0x28   : > { %284 = vst.msk [vmem:[#allocation2 + $0x98] sm:$0xff] %vm264_vm0, %v2603_v41  ;;  %4022 = vst [vmem:[#allocation8_spill] sm:$0xff] %v2625_v45  ;;  %v2656_v54 = vld [vmem:[%s2467_s5 + $0x88] sm:$0x3]  ;;  %v2659_v55 = vld [vmem:[%s2467_s5 + $0x140] sm:$0xff]  ;;  %v392_v21 = vrot.slane %v2603_v41, 1 }
  0x29   : > { %285 = vst.msk [vmem:[#allocation2 + $0xa0] sm:$0xff] %vm264_vm0, %v2614_v44  ;;  %286 = vst.msk [vmem:[#allocation2 + $0xa8] sm:$0xff] %vm264_vm0, %v2611_v43  ;;  %v2666_v56 = vld [vmem:[%s2467_s5 + $0x138] sm:$0xff]  ;;  %v2676_v58 = vld [vmem:[%s2467_s5 + $0x150] sm:$0xff]  ;;  %v374_v61 = vrot.slane %v2656_v54, 1 }
  0x2a   : > { %4023 = vst [vmem:[#allocation9_spill] sm:$0xff] %v2642_v50  ;;  %287 = vst.msk [vmem:[#allocation2 + $0xb0] sm:$0xff] %vm264_vm0, %v2628_v46  ;;  %440 = vrot.lane.b32.xlu1 %v2637_v47, %s2377_s6  ;;  %v2673_v57 = vld [vmem:[%s2467_s5 + $0x158] sm:$0xff]  ;;  %v2688_v62 = vld [vmem:[%s2467_s5 + $0x170] sm:$0xff] }
  0x2b   : > { %288 = vst.msk [vmem:[#allocation2 + $0xb8] sm:$0xff] %vm264_vm0, %v2625_v45  ;;  %4024 = vst [vmem:[#allocation10_spill] sm:$0xff] %v2652_v52  ;;  %438 = vrot.lane.b32.xlu0 %v2652_v52, %s2377_s6  ;;  %v2691_v63 = vld [vmem:[%s2467_s5 + $0x168] sm:$0xff]  ;;  %v2702_v6 = vld [vmem:[%s2467_s5 + $0xa0] sm:$0x3]  ;;  %v2713_v8 = vsel %vm345_vm1, %v372_v60, %v374_v61  ;;  %v2750_v61 = vsel %vm345_vm1, %v381_v39, %v382_v26  ;;  %v391_v39 = vrot.slane %v2606_v42, 1 }
  0x2c   : > { %4025 = vst [vmem:[#allocation11_spill] sm:$0xff] %v2659_v55  ;;  %289 = vst.msk [vmem:[#allocation2 + $0xc0] sm:$0xff] %vm264_vm0, %v2645_v51  ;;  %v379_v14 = vrot.slane %v2702_v6, 1  ;;  %v2722_v22 = vld [vmem:[%s2467_s5 + $0xb8] sm:$0x3] }
  0x2d   : > { %290 = vst.msk [vmem:[#allocation2 + $0xc8] sm:$0xff] %vm264_vm0, %v2642_v50  ;;  %4026 = vst [vmem:[#allocation12_spill] sm:$0xff] %v2666_v56  ;;  %v384_v34 = vrot.slane %v2722_v22, 1  ;;  %v2738_v48 = vld [vmem:[%s2467_s5 + $0xd0] sm:$0x3] }
  0x2e   : > { %292 = vst.msk [vmem:[#allocation2 + $0xd8] sm:$0xff] %vm264_vm0, %v2659_v55  ;;  %4027 = vst [vmem:[#allocation13_spill] sm:$0xff] %v2676_v58  ;;  %444 = vrot.lane.b32.xlu1 %v2683_v59, %s2377_s6  ;;  %v2729_v25 = vsel %vm345_vm1, %v377_v9, %v379_v14  ;;  %v389_v60 = vrot.slane %v2738_v48, 1  ;;  %v2754_v9 = vld [vmem:[%s2467_s5 + $0xe8] sm:$0x3] }
  0x2f   : > { %291 = vst.msk [vmem:[#allocation2 + $0xd0] sm:$0xff] %vm264_vm0, %v2666_v56  ;;  %4028 = vst [vmem:[#allocation14_spill] sm:$0xff] %v2683_v59  ;;  %442 = vrot.lane.b32.xlu0 %v2698_v3, %s2377_s6  ;;  %v2745_v49 = vsel %vm345_vm1, %v382_v26, %v384_v34  ;;  %v394_v34 = vrot.slane %v2754_v9, 1  ;;  %v2766_v26 = vsel %vm345_vm1, %v386_v4, %v387_v53  ;;  %v396_v4 = vrot.slane %v2614_v44, 1  ;;  %v2850_v59 = vld [vmem:[%s2467_s5 + $0x178] sm:$0x3] }
  0x30   : > { %293 = vst.msk [vmem:[#allocation2 + $0xe0] sm:$0xff] %vm264_vm0, %v2676_v58  ;;  %294 = vst.msk [vmem:[#allocation2 + $0xe8] sm:$0xff] %vm264_vm0, %v2673_v57  ;;  %v2761_v14 = vsel %vm345_vm1, %v387_v53, %v389_v60  ;;  %v2782_v53 = vsel %vm345_vm1, %v391_v39, %v392_v21  ;;  %v401_v39 = vrot.slane %v2628_v46, 1 }
  0x31   : > { %4029 = vst [vmem:[#allocation15_spill] sm:$0xff] %v2698_v3  ;;  %295 = vst.msk [vmem:[#allocation2 + $0xf0] sm:$0xff] %vm264_vm0, %v2691_v63  ;;  %v2777_v60 = vsel %vm345_vm1, %v392_v21, %v394_v34  ;;  %v2834_v3 = vld [vmem:[%s2467_s5 + $0x160] sm:$0x3] }
  0x32   : > { %296 = vst.msk [vmem:[#allocation2 + $0xf8] sm:$0xff] %vm264_vm0, %v2688_v62  ;;  %4030 = vst [vmem:[#allocation16_spill] sm:$0xff] %v2713_v8  ;;  %448 = vrot.lane.b32.xlu1 %v2713_v8, %s2377_s6  ;;  %v2818_v8 = vld [vmem:[%s2467_s5 + $0x148] sm:$0x3] }
  0x33   : > { %4031 = vst [vmem:[#allocation17_spill] sm:$0xff] %v2718_v17  ;;  %446 = vrot.lane.b32.xlu0 %v2718_v17, %s2377_s6  ;;  %4032 = vst [vmem:[#allocation18_spill] sm:$0xff] %v2729_v25  ;;  %v2802_v17 = vld [vmem:[%s2467_s5 + $0x130] sm:$0x3] }
  0x34   : > { %4033 = vst [vmem:[#allocation19_spill] sm:$0xff] %v2734_v35  ;;  %4034 = vst [vmem:[#allocation20_spill] sm:$0xff] %v2745_v49 }
  0x35   : > { %4035 = vst [vmem:[#allocation21_spill] sm:$0xff] %v2750_v61  ;;  %4036 = vst [vmem:[#allocation22_spill] sm:$0xff] %v2761_v14 }
  0x36   : > { %452 = vrot.lane.b32.xlu1 %v2729_v25, %s2377_s6  ;;  %4037 = vst [vmem:[#allocation23_spill] sm:$0xff] %v2766_v26  ;;  %4038 = vst [vmem:[#allocation24_spill] sm:$0xff] %v2777_v60  ;;  %v2786_v25 = vld [vmem:[%s2467_s5 + $0x118] sm:$0x3] }
  0x37   : > { %450 = vrot.lane.b32.xlu0 %v2734_v35, %s2377_s6  ;;  %v2770_v35 = vld [vmem:[%s2467_s5 + $0x100] sm:$0x3]  ;;  %4039 = vst [vmem:[#allocation25_spill] sm:$0xff] %v2782_v53 }
  0x3a   : > { %456 = vrot.lane.b32.xlu1 %v2745_v49, %s2377_s6  ;;  %v399_v49 = vrot.slane %v2770_v35, 1 }
  0x3b   : > { %454 = vrot.lane.b32.xlu0 %v2750_v61, %s2377_s6  ;;  %v397_v61 = vrot.slane %v2611_v43, 1 }
  0x3d   : > { %v2793_v34 = vsel %vm345_vm1, %v397_v61, %v399_v49  ;;  %v2798_v21 = vsel %vm345_vm1, %v396_v4, %v397_v61  ;;  %v406_v4 = vrot.slane %v2645_v51, 1 }
  0x3e   : > { %460 = vrot.lane.b32.xlu1 %v2761_v14, %s2377_s6  ;;  %4040 = vst [vmem:[#allocation26_spill] sm:$0xff] %v2793_v34  ;;  %v404_v14 = vrot.slane %v2786_v25, 1  ;;  %4041 = vst [vmem:[#allocation27_spill] sm:$0xff] %v2798_v21 }
  0x3f   : > { %458 = vrot.lane.b32.xlu0 %v2766_v26, %s2377_s6  ;;  %v402_v26 = vrot.slane %v2625_v45, 1 }
  0x41   : > { %v2809_v49 = vsel %vm345_vm1, %v402_v26, %v404_v14  ;;  %v2814_v61 = vsel %vm345_vm1, %v401_v39, %v402_v26  ;;  %v411_v39 = vrot.slane %v2666_v56, 1 }
  0x42   : > { %464 = vrot.lane.b32.xlu1 %v2777_v60, %s2377_s6  ;;  %4042 = vst [vmem:[#allocation28_spill] sm:$0xff] %v2809_v49  ;;  %v409_v60 = vrot.slane %v2802_v17, 1  ;;  %4043 = vst [vmem:[#allocation29_spill] sm:$0xff] %v2814_v61 }
  0x43   : > { %462 = vrot.lane.b32.xlu0 %v2782_v53, %s2377_s6  ;;  %v407_v53 = vrot.slane %v2642_v50, 1 }
  0x45   : > { %v2825_v14 = vsel %vm345_vm1, %v407_v53, %v409_v60  ;;  %v2830_v26 = vsel %vm345_vm1, %v406_v4, %v407_v53  ;;  %v416_v4 = vrot.slane %v2676_v58, 1 }
  0x46   : > { %468 = vrot.lane.b32.xlu1 %v2793_v34, %s2377_s6  ;;  %4044 = vst [vmem:[#allocation30_spill] sm:$0xff] %v2825_v14  ;;  %v414_v34 = vrot.slane %v2818_v8, 1  ;;  %4045 = vst [vmem:[#allocation31_spill] sm:$0xff] %v2830_v26 }
  0x47   : > { %466 = vrot.lane.b32.xlu0 %v2798_v21, %s2377_s6  ;;  %v412_v21 = vrot.slane %v2659_v55, 1 }
  0x49   : > { %v2841_v60 = vsel %vm345_vm1, %v412_v21, %v414_v34  ;;  %v2846_v53 = vsel %vm345_vm1, %v411_v39, %v412_v21  ;;  %v421_v39 = vrot.slane %v2691_v63, 1 }
  0x4a   : > { %472 = vrot.lane.b32.xlu1 %v2809_v49, %s2377_s6  ;;  %4046 = vst [vmem:[#allocation32_spill] sm:$0xff] %v2841_v60  ;;  %v419_v49 = vrot.slane %v2834_v3, 1  ;;  %4047 = vst [vmem:[#allocation33_spill] sm:$0xff] %v2846_v53 }
  0x4b   : > { %470 = vrot.lane.b32.xlu0 %v2814_v61, %s2377_s6  ;;  %v417_v61 = vrot.slane %v2673_v57, 1 }
  0x4d   : > { %v2857_v34 = vsel %vm345_vm1, %v417_v61, %v419_v49  ;;  %v2862_v21 = vsel %vm345_vm1, %v416_v4, %v417_v61  ;;  %v557_v49 = vrot.slane %v2481_v5, 2  ;;  %v556_v61 = vrot.slane %v2476_v2, 2 }
  0x4e   : > { %476 = vrot.lane.b32.xlu1 %v2825_v14, %s2377_s6  ;;  %4048 = vst [vmem:[#allocation34_spill] sm:$0xff] %v2857_v34  ;;  %v424_v14 = vrot.slane %v2850_v59, 1  ;;  %4049 = vst [vmem:[#allocation35_spill] sm:$0xff] %v2862_v21  ;;  %v564_v5 = vrot.slane %v2485_v7, 2  ;;  %v566_v7 = vrot.slane %v2502_v12, 2 }
  0x4f   : > { %474 = vrot.lane.b32.xlu0 %v2830_v26, %s2377_s6  ;;  %v422_v26 = vrot.slane %v2688_v62, 1 }
  0x51   : > { %v2875_v52 = vsel %vm345_vm1, %v421_v39, %v422_v26  ;;  %v567_v39 = vrot.slane %v2499_v11, 2 }
  0x52   : > { %480 = vrot.lane.b32.xlu1 %v2841_v60, %s2377_s6  ;;  %v559_v60 = vrot.slane %v2496_v10, 2  ;;  %4051 = vst [vmem:[#allocation37_spill] sm:$0xff] %v2875_v52  ;;  %v558_v10 = vsel %vm555_vm2, %v556_v61, %v557_v49  ;;  %v572_v61 = vrot.slane %v2514_v16, 2 }
  0x53   : > { %478 = vrot.lane.b32.xlu0 %v2846_v53, %s2377_s6  ;;  %v2870_v53 = vsel %vm345_vm1, %v422_v26, %v424_v14  ;;  %v562_v14 = vrot.slane %v2473_v1, 2  ;;  %v561_v26 = vrot.slane %v2470_v0, 2 }
  0x54   : > { %4050 = vst [vmem:[#allocation36_spill] sm:$0xff] %v2870_v53  ;;  %v560_v4 = vsel %vm555_vm2, %v557_v49, %v559_v60  ;;  %v569_v60 = vrot.slane %v2511_v15, 2  ;;  %v2908_v15 = vsel %vm555_vm2, %v566_v7, %v567_v39  ;;  %v582_v7 = vrot.slane %v2541_v24, 2 }
  0x55   : > { %v2890_v2 = vsel %vm555_vm2, %v562_v14, %v564_v5 }
  0x56   : > { %484 = vrot.lane.b32.xlu1 %v2857_v34, %s2377_s6  ;;  %v2903_v49 = vsel %vm555_vm2, %v567_v39, %v569_v60  ;;  %v576_v39 = vrot.slane %v2538_v23, 2  ;;  %v599_v34 = vrot.slane %v2738_v48, 2 }
  0x57   : > { %482 = vrot.lane.b32.xlu0 %v2862_v21, %s2377_s6  ;;  %v594_v21 = vrot.slane %v2722_v22, 2 }
  0x5a   : > { %488 = vrot.lane.b32.xlu1 %v2870_v53, %s2377_s6  ;;  %v589_v53 = vrot.slane %v2702_v6, 2 }
  0x5b   : > { %486 = vrot.lane.b32.xlu0 %v2875_v52, %s2377_s6  ;;  %v2895_v52 = vsel %vm555_vm2, %v561_v26, %v562_v14  ;;  %v571_v14 = vrot.slane %v2524_v18, 2  ;;  %v579_v26 = vrot.slane %v2586_v36, 2 }
  0x5e   : > { %638 = vrot.lane.b32.xlu1 %v560_v4, %s2378_s7  ;;  %v574_v4 = vrot.slane %v2550_v27, 2  ;;  %v2921_v27 = vsel %vm555_vm2, %v571_v14, %v572_v61 }
  0x5f   : > { %636 = vrot.lane.b32.xlu0 %v558_v10, %s2378_s7  ;;  %v577_v10 = vrot.slane %v2527_v19, 2 }
  0x60   : > { %v2916_v5 = vsel %vm555_vm2, %v572_v61, %v574_v4  ;;  %v584_v4 = vrot.slane %v2656_v54, 2  ;;  %v581_v61 = vrot.slane %v2553_v28, 2 }
  0x61   : > { %v2929_v60 = vsel %vm555_vm2, %v577_v10, %v579_v26  ;;  %v2934_v36 = vsel %vm555_vm2, %v576_v39, %v577_v10  ;;  %v587_v26 = vrot.slane %v2560_v29, 2  ;;  %v586_v10 = vrot.slane %v2563_v30, 2 }
  0x62   : > { %642 = vrot.lane.b32.xlu1 %v2890_v2, %s2378_s7  ;;  %v2942_v14 = vsel %vm555_vm2, %v582_v7, %v584_v4  ;;  %v2947_v54 = vsel %vm555_vm2, %v581_v61, %v582_v7  ;;  %v592_v4 = vrot.slane %v2570_v31, 2  ;;  %v591_v7 = vrot.slane %v2573_v32, 2 }
  0x63   : > { %640 = vrot.lane.b32.xlu0 %v2895_v52, %s2378_s7  ;;  %v2955_v39 = vsel %vm555_vm2, %v587_v26, %v589_v53  ;;  %v2960_v6 = vsel %vm555_vm2, %v586_v10, %v587_v26  ;;  %v597_v53 = vrot.slane %v2589_v37, 2  ;;  %v596_v26 = vrot.slane %v2600_v40, 2 }
  0x64   : > { %4052 = vst [vmem:[#allocation38_spill] sm:$0xff] %v2960_v6  ;;  %v2968_v61 = vsel %vm555_vm2, %v592_v4, %v594_v21  ;;  %v2973_v22 = vsel %vm555_vm2, %v591_v7, %v592_v4  ;;  %v602_v21 = vrot.slane %v2603_v41, 2  ;;  %v601_v4 = vrot.slane %v2606_v42, 2 }
  0x65   : > { %v2981_v10 = vsel %vm555_vm2, %v597_v53, %v599_v34  ;;  %v2986_v48 = vsel %vm555_vm2, %v596_v26, %v597_v53  ;;  %v607_v34 = vrot.slane %v2611_v43, 2  ;;  %v609_v41 = vrot.slane %v2770_v35, 2 }
  0x66   : > { %646 = vrot.lane.b32.xlu1 %v2903_v49, %s2378_s7  ;;  %v606_v53 = vrot.slane %v2614_v44, 2  ;;  %v614_v43 = vrot.slane %v2786_v25, 2 }
  0x67   : > { %644 = vrot.lane.b32.xlu0 %v2908_v15, %s2378_s7  ;;  %v3007_v26 = vsel %vm555_vm2, %v607_v34, %v609_v41  ;;  %v617_v41 = vrot.slane %v2642_v50, 2  ;;  %v624_v50 = vrot.slane %v2818_v8, 2 }
  0x68   : > { %v3012_v35 = vsel %vm555_vm2, %v606_v53, %v607_v34  ;;  %v616_v34 = vrot.slane %v2645_v51, 2 }
  0x6a   : > { %650 = vrot.lane.b32.xlu1 %v2916_v5, %s2378_s7 }
  0x6b   : > { %648 = vrot.lane.b32.xlu0 %v2921_v27, %s2378_s7 }
  0x6e   : > { %654 = vrot.lane.b32.xlu1 %v2929_v60, %s2378_s7 }
  0x6f   : > { %652 = vrot.lane.b32.xlu0 %v2934_v36, %s2378_s7 }
  0x72   : > { %658 = vrot.lane.b32.xlu1 %v2942_v14, %s2378_s7 }
  0x73   : > { %656 = vrot.lane.b32.xlu0 %v2947_v54, %s2378_s7 }
  0x76   : > { %662 = vrot.lane.b32.xlu1 %v2955_v39, %s2378_s7 }
  0x77   : > { %660 = vrot.lane.b32.xlu0 %v2960_v6, %s2378_s7  ;;  %v604_v6 = vrot.slane %v2754_v9, 2  ;;  %v2999_v9 = vsel %vm555_vm2, %v601_v4, %v602_v21 }
  0x79   : > { %v2994_v7 = vsel %vm555_vm2, %v602_v21, %v604_v6  ;;  %v612_v6 = vrot.slane %v2625_v45, 2  ;;  %v611_v21 = vrot.slane %v2628_v46, 2  ;;  %v619_v45 = vrot.slane %v2802_v17, 2 }
  0x7a   : > { %666 = vrot.lane.b32.xlu1 %v2968_v61, %s2378_s7  ;;  %v3038_v17 = vsel %vm555_vm2, %v616_v34, %v617_v41  ;;  %v626_v34 = vrot.slane %v2676_v58, 2 }
  0x7b   : > { %664 = vrot.lane.b32.xlu0 %v2973_v22, %s2378_s7  ;;  %v3020_v4 = vsel %vm555_vm2, %v612_v6, %v614_v43  ;;  %v3025_v25 = vsel %vm555_vm2, %v611_v21, %v612_v6  ;;  %v3033_v53 = vsel %vm555_vm2, %v617_v41, %v619_v45  ;;  %v622_v43 = vrot.slane %v2659_v55, 2 }
  0x7c   : > { %v621_v6 = vrot.slane %v2666_v56, 2  ;;  %v627_v45 = vrot.slane %v2673_v57, 2  ;;  %v629_v55 = vrot.slane %v2834_v3, 2  ;;  %v632_v3 = vrot.slane %v2688_v62, 2 }
  0x7d   : > { %v3046_v21 = vsel %vm555_vm2, %v622_v43, %v624_v50 }
  0x7e   : > { %670 = vrot.lane.b32.xlu1 %v2981_v10, %s2378_s7  ;;  %v3051_v41 = vsel %vm555_vm2, %v621_v6, %v622_v43  ;;  %v3061_v50 = vsel %vm555_vm2, %v627_v45, %v629_v55  ;;  %v634_v43 = vrot.slane %v2850_v59, 2  ;;  %v3066_v58 = vsel %vm555_vm2, %v626_v34, %v627_v45 }
  0x7f   : > { %668 = vrot.lane.b32.xlu0 %v2986_v48, %s2378_s7 }
  0x80   : > { %v3076_v55 = vsel %vm555_vm2, %v632_v3, %v634_v43 }
  0x82   : > { %674 = vrot.lane.b32.xlu1 %v2994_v7, %s2378_s7 }
  0x83   : > { %672 = vrot.lane.b32.xlu0 %v2999_v9, %s2378_s7 }
  0x86   : > { %678 = vrot.lane.b32.xlu1 %v3007_v26, %s2378_s7 }
  0x87   : > { %676 = vrot.lane.b32.xlu0 %v3012_v35, %s2378_s7 }
  0x8a   : > { %682 = vrot.lane.b32.xlu1 %v3020_v4, %s2378_s7 }
  0x8b   : > { %680 = vrot.lane.b32.xlu0 %v3025_v25, %s2378_s7 }
  0x8e   : > { %686 = vrot.lane.b32.xlu1 %v3033_v53, %s2378_s7 }
  0x8f   : > { %684 = vrot.lane.b32.xlu0 %v3038_v17, %s2378_s7 }
  0x90   : > { %v431_v8 = vpop.permute.xlu1 %430 }
  0x91   : > { %525 = vst.msk [vmem:[#allocation2 + $0x10] sm:$0xff] %vm522_vm3, %v431_v8  ;;  %v427_v56 = vpop.permute.xlu0 %426  ;;  %v631_v8 = vrot.slane %v2691_v63, 2 }
  0x92   : > { %523 = vst.msk [vmem:[#allocation2] sm:$0xff] %vm522_vm3, %v427_v56  ;;  %690 = vrot.lane.b32.xlu1 %v3046_v21, %s2378_s7 }
  0x93   : > { %688 = vrot.lane.b32.xlu0 %v3051_v41, %s2378_s7  ;;  %v3079_v45 = vsel %vm555_vm2, %v631_v8, %v632_v3 }
  0x94   : > { %v433_v6 = vpop.permute.xlu1 %432 }
  0x95   : > { %526 = vst.msk [vmem:[#allocation2 + $0x18] sm:$0xff] %vm522_vm3, %v433_v6  ;;  %v429_v56 = vpop.permute.xlu0 %428 }
  0x96   : > { %524 = vst.msk [vmem:[#allocation2 + $0x8] sm:$0xff] %vm522_vm3, %v429_v56  ;;  %694 = vrot.lane.b32.xlu1 %v3061_v50, %s2378_s7 }
  0x97   : > { %692 = vrot.lane.b32.xlu0 %v3066_v58, %s2378_s7 }
  0x98   : > { %v437_v59 = vpop.permute.xlu1 %436 }
  0x99   : > { %528 = vst.msk [vmem:[#allocation2 + $0x28] sm:$0xff] %vm522_vm3, %v437_v59  ;;  %v435_v34 = vpop.permute.xlu0 %434 }
  0x9a   : > { %527 = vst.msk [vmem:[#allocation2 + $0x20] sm:$0xff] %vm522_vm3, %v435_v34  ;;  %698 = vrot.lane.b32.xlu1 %v3076_v55, %s2378_s7 }
  0x9b   : > { %696 = vrot.lane.b32.xlu0 %v3079_v45, %s2378_s7 }
  0x9c   : > { %v441_v6 = vpop.permute.xlu1 %440 }
  0x9d   : > { %530 = vst.msk [vmem:[#allocation2 + $0x38] sm:$0xff] %vm522_vm3, %v441_v6  ;;  %v439_v43 = vpop.permute.xlu0 %438 }
  0x9e   : > { %529 = vst.msk [vmem:[#allocation2 + $0x30] sm:$0xff] %vm522_vm3, %v439_v43  ;;  %769 = vrot.lane.b32.xlu1 %v2473_v1, %s2379_s8 }
  0x9f   : > { %767 = vrot.lane.b32.xlu0 %v2470_v0, %s2379_s8 }
  0xa0   : > { %v445_v3 = vpop.permute.xlu1 %444 }
  0xa1   : > { %532 = vst.msk [vmem:[#allocation2 + $0x48] sm:$0xff] %vm522_vm3, %v445_v3  ;;  %v443_v8 = vpop.permute.xlu0 %442 }
  0xa2   : > { %531 = vst.msk [vmem:[#allocation2 + $0x40] sm:$0xff] %vm522_vm3, %v443_v8  ;;  %773 = vrot.lane.b32.xlu1 %v2499_v11, %s2379_s8 }
  0xa3   : > { %771 = vrot.lane.b32.xlu0 %v2502_v12, %s2379_s8 }
  0xa4   : > { %v449_v56 = vpop.permute.xlu1 %448 }
  0xa5   : > { %534 = vst.msk [vmem:[#allocation2 + $0x58] sm:$0xff] %vm522_vm3, %v449_v56  ;;  %v447_v59 = vpop.permute.xlu0 %446 }
  0xa6   : > { %533 = vst.msk [vmem:[#allocation2 + $0x50] sm:$0xff] %vm522_vm3, %v447_v59  ;;  %777 = vrot.lane.b32.xlu1 %v2514_v16, %s2379_s8 }
  0xa7   : > { %775 = vrot.lane.b32.xlu0 %v2524_v18, %s2379_s8 }
  0xa8   : > { %v453_v0 = vpop.permute.xlu1 %452 }
  0xa9   : > { %536 = vst.msk [vmem:[#allocation2 + $0x68] sm:$0xff] %vm522_vm3, %v453_v0  ;;  %v451_v1 = vpop.permute.xlu0 %450 }
  0xaa   : > { %535 = vst.msk [vmem:[#allocation2 + $0x60] sm:$0xff] %vm522_vm3, %v451_v1  ;;  %781 = vrot.lane.b32.xlu1 %v2527_v19, %s2379_s8 }
  0xab   : > { %779 = vrot.lane.b32.xlu0 %v2538_v23, %s2379_s8 }
  0xac   : > { %v457_v34 = vpop.permute.xlu1 %456 }
  0xad   : > { %538 = vst.msk [vmem:[#allocation2 + $0x78] sm:$0xff] %vm522_vm3, %v457_v34  ;;  %v455_v6 = vpop.permute.xlu0 %454 }
  0xae   : > { %537 = vst.msk [vmem:[#allocation2 + $0x70] sm:$0xff] %vm522_vm3, %v455_v6  ;;  %785 = vrot.lane.b32.xlu1 %v2541_v24, %s2379_s8 }
  0xaf   : > { %783 = vrot.lane.b32.xlu0 %v2553_v28, %s2379_s8 }
  0xb0   : > { %v461_v43 = vpop.permute.xlu1 %460 }
  0xb1   : > { %540 = vst.msk [vmem:[#allocation2 + $0x88] sm:$0xff] %vm522_vm3, %v461_v43  ;;  %v459_v3 = vpop.permute.xlu0 %458 }
  0xb2   : > { %539 = vst.msk [vmem:[#allocation2 + $0x80] sm:$0xff] %vm522_vm3, %v459_v3  ;;  %789 = vrot.lane.b32.xlu1 %v2560_v29, %s2379_s8 }
  0xb3   : > { %787 = vrot.lane.b32.xlu0 %v2563_v30, %s2379_s8 }
  0xb4   : > { %v465_v8 = vpop.permute.xlu1 %464 }
  0xb5   : > { %542 = vst.msk [vmem:[#allocation2 + $0x98] sm:$0xff] %vm522_vm3, %v465_v8  ;;  %v463_v56 = vpop.permute.xlu0 %462 }
  0xb6   : > { %541 = vst.msk [vmem:[#allocation2 + $0x90] sm:$0xff] %vm522_vm3, %v463_v56  ;;  %793 = vrot.lane.b32.xlu1 %v2570_v31, %s2379_s8 }
  0xb7   : > { %791 = vrot.lane.b32.xlu0 %v2573_v32, %s2379_s8 }
  0xb8   : > { %v469_v59 = vpop.permute.xlu1 %468 }
  0xb9   : > { %544 = vst.msk [vmem:[#allocation2 + $0xa8] sm:$0xff] %vm522_vm3, %v469_v59  ;;  %v467_v0 = vpop.permute.xlu0 %466 }
  0xba   : > { %543 = vst.msk [vmem:[#allocation2 + $0xa0] sm:$0xff] %vm522_vm3, %v467_v0  ;;  %797 = vrot.lane.b32.xlu1 %v2589_v37, %s2379_s8  ;;  %v2312_v0 = vld [vmem:[%s3948_s1 + $0x10] ss:$0 sps:$4 sm:$0x33]  }
  0xbb   : > { %795 = vrot.lane.b32.xlu0 %v2600_v40, %s2379_s8  ;;  %2262 = vmatprep.subr.msk.bf16.mxu0 %vm1689_vm5, %v2312_v0 }
  0xbc   : > { %v473_v1 = vpop.permute.xlu1 %472  ;;  %2263 = vmatprep.subr.msk.bf16.mxu1 %vm1689_vm5, %v2312_v0 }
  0xbd   : > { %546 = vst.msk [vmem:[#allocation2 + $0xb8] sm:$0xff] %vm522_vm3, %v473_v1  ;;  %v471_v34 = vpop.permute.xlu0 %470 }
  0xbe   : > { %545 = vst.msk [vmem:[#allocation2 + $0xb0] sm:$0xff] %vm522_vm3, %v471_v34  ;;  %904 = vrot.lane.b32.xlu1 %v2533_v20, %s2380_s9 }
  0xbf   : > { %902 = vrot.lane.b32.xlu0 %v2507_v13, %s2380_s9 }
  0xc0   : > { %v477_v6 = vpop.permute.xlu1 %476 }
  0xc1   : > { %548 = vst.msk [vmem:[#allocation2 + $0xc8] sm:$0xff] %vm522_vm3, %v477_v6  ;;  %v475_v43 = vpop.permute.xlu0 %474  ;;  %v4053_v6 = vld [vmem:[#allocation10_spill] sm:$0xff] }
  0xc2   : > { %547 = vst.msk [vmem:[#allocation2 + $0xc0] sm:$0xff] %vm522_vm3, %v475_v43  ;;  %908 = vrot.lane.b32.xlu1 %v2581_v33, %s2380_s9 }
  0xc3   : > { %906 = vrot.lane.b32.xlu0 %v2596_v38, %s2380_s9 }
  0xc4   : > { %v481_v3 = vpop.permute.xlu1 %480 }
  0xc5   : > { %550 = vst.msk [vmem:[#allocation2 + $0xd8] sm:$0xff] %vm522_vm3, %v481_v3  ;;  %v479_v8 = vpop.permute.xlu0 %478 }
  0xc6   : > { %549 = vst.msk [vmem:[#allocation2 + $0xd0] sm:$0xff] %vm522_vm3, %v479_v8  ;;  %1038 = vrot.lane.b32.xlu1 %v2890_v2, %s2381_s10 }
  0xc7   : > { %1036 = vrot.lane.b32.xlu0 %v2895_v52, %s2381_s10 }
  0xc8   : > { %v485_v13 = vpop.permute.xlu1 %484 }
  0xc9   : > { %552 = vst.msk [vmem:[#allocation2 + $0xe8] sm:$0xff] %vm522_vm3, %v485_v13  ;;  %v483_v20 = vpop.permute.xlu0 %482 }
  0xca   : > { %551 = vst.msk [vmem:[#allocation2 + $0xe0] sm:$0xff] %vm522_vm3, %v483_v20  ;;  %1042 = vrot.lane.b32.xlu1 %v2903_v49, %s2381_s10 }
  0xcb   : > { %1040 = vrot.lane.b32.xlu0 %v2908_v15, %s2381_s10 }
  0xcc   : > { %v489_v56 = vpop.permute.xlu1 %488 }
  0xcd   : > { %554 = vst.msk [vmem:[#allocation2 + $0xf8] sm:$0xff] %vm522_vm3, %v489_v56  ;;  %v487_v59 = vpop.permute.xlu0 %486  ;;  %v4054_v56 = vld [vmem:[#allocation14_spill] sm:$0xff] }
  0xce   : > { %553 = vst.msk [vmem:[#allocation2 + $0xf0] sm:$0xff] %vm522_vm3, %v487_v59  ;;  %1169 = vrot.lane.b32.xlu1 %v2499_v11, %s2382_s11  ;;  %v4055_v59 = vld [vmem:[#allocation15_spill] sm:$0xff] }
  0xcf   : > { %1167 = vrot.lane.b32.xlu0 %v2502_v12, %s2382_s11  ;;  %v1691_v12 = vsel %vm1689_vm5, %v2312_v0, 0 }
  0xd0   : > { %v639_v52 = vpop.permute.xlu1 %638  ;;  %2219 = vmatpush3.bf16.msra.mxu0 %v1691_v12  ;;  %2259 = vmatpush3.bf16.msra.mxu1 %v1691_v12 }
  0xd1   : > { %734 = vst.msk [vmem:[#allocation2 + $0x8] sm:$0xff] %vm732_vm4, %v639_v52  ;;  %v637_v2 = vpop.permute.xlu0 %636 }
  0xd2   : > { %733 = vst.msk [vmem:[#allocation2] sm:$0xff] %vm732_vm4, %v637_v2  ;;  %1173 = vrot.lane.b32.xlu1 %v2514_v16, %s2382_s11  ;;  %v2313_v16 = vld [vmem:[%s3948_s1 + $0x8] sm:$0xff]  }
  0xd3   : > { %1171 = vrot.lane.b32.xlu0 %v2524_v18, %s2382_s11  ;;  %2220 = vmatprep.subr.bf16.mxu0 %v2313_v16 }
  0xd4   : > { %v643_v11 = vpop.permute.xlu1 %642  ;;  %2257 = vmatprep.subr.bf16.mxu1 %v2313_v16  ;;  %2221 = vmatpush3.bf16.msra.mxu0 %v2313_v16 }
  0xd5   : > { %736 = vst.msk [vmem:[#allocation2 + $0x18] sm:$0xff] %vm732_vm4, %v643_v11  ;;  %v641_v1 = vpop.permute.xlu0 %640  ;;  %2260 = vmatpush3.bf16.msra.mxu1 %v2313_v16 }
  0xd6   : > { %735 = vst.msk [vmem:[#allocation2 + $0x10] sm:$0xff] %vm732_vm4, %v641_v1  ;;  %1304 = vrot.lane.b32.xlu1 %v2581_v33, %s2383_s14  ;;  %v2314_v33 = vld [vmem:[%s3948_s1] sm:$0xff]  }
  0xd7   : > { %1302 = vrot.lane.b32.xlu0 %v2596_v38, %s2383_s14  ;;  %2222 = vmatprep.subr.bf16.mxu0 %v2314_v33 }
  0xd8   : > { %v647_v18 = vpop.permute.xlu1 %646  ;;  %2258 = vmatprep.subr.bf16.mxu1 %v2314_v33  ;;  %2223 = vmatpush3.bf16.msra.mxu0 %v2314_v33 }
  0xd9   : > { %738 = vst.msk [vmem:[#allocation2 + $0x28] sm:$0xff] %vm732_vm4, %v647_v18  ;;  %v645_v34 = vpop.permute.xlu0 %644  ;;  %2261 = vmatpush3.bf16.msra.mxu1 %v2314_v33 }
  0xda   : > { %737 = vst.msk [vmem:[#allocation2 + $0x20] sm:$0xff] %vm732_vm4, %v645_v34  ;;  %1308 = vrot.lane.b32.xlu1 %v2637_v47, %s2383_s14 }
  0xdb   : > { %1306 = vrot.lane.b32.xlu0 %v4053_v6, %s2383_s14 }
  0xdc   : > { %v651_v38 = vpop.permute.xlu1 %650 }
  0xdd   : > { %740 = vst.msk [vmem:[#allocation2 + $0x38] sm:$0xff] %vm732_vm4, %v651_v38  ;;  %v649_v43 = vpop.permute.xlu0 %648 }
  0xde   : > { %739 = vst.msk [vmem:[#allocation2 + $0x30] sm:$0xff] %vm732_vm4, %v649_v43  ;;  %1438 = vrot.lane.b32.xlu1 %v2903_v49, %s2384_s29 }
  0xdf   : > { %1436 = vrot.lane.b32.xlu0 %v2908_v15, %s2384_s29 }
  0xe0   : > { %v655_v3 = vpop.permute.xlu1 %654 }
  0xe1   : > { %742 = vst.msk [vmem:[#allocation2 + $0x48] sm:$0xff] %vm732_vm4, %v655_v3  ;;  %v653_v8 = vpop.permute.xlu0 %652  ;;  %v4058_v3 = vld [vmem:[#allocation18_spill] sm:$0xff] }
  0xe2   : > { %741 = vst.msk [vmem:[#allocation2 + $0x40] sm:$0xff] %vm732_vm4, %v653_v8  ;;  %1442 = vrot.lane.b32.xlu1 %v2916_v5, %s2384_s29  ;;  %v4059_v8 = vld [vmem:[#allocation19_spill] sm:$0xff] }
  0xe3   : > { %1440 = vrot.lane.b32.xlu0 %v2921_v27, %s2384_s29 }
  0xe4   : > { %v659_v13 = vpop.permute.xlu1 %658 }
  0xe5   : > { %744 = vst.msk [vmem:[#allocation2 + $0x58] sm:$0xff] %vm732_vm4, %v659_v13  ;;  %v657_v20 = vpop.permute.xlu0 %656 }
  0xe6   : > { %743 = vst.msk [vmem:[#allocation2 + $0x50] sm:$0xff] %vm732_vm4, %v657_v20  ;;  %912 = vrot.lane.b32.xlu1 %v2637_v47, %s2380_s9 }
  0xe7   : > { %910 = vrot.lane.b32.xlu0 %v4053_v6, %s2380_s9 }
  0xe8   : > { %v663_v49 = vpop.permute.xlu1 %662 }
  0xe9   : > { %746 = vst.msk [vmem:[#allocation2 + $0x68] sm:$0xff] %vm732_vm4, %v663_v49  ;;  %v661_v15 = vpop.permute.xlu0 %660 }
  0xea   : > { %745 = vst.msk [vmem:[#allocation2 + $0x60] sm:$0xff] %vm732_vm4, %v661_v15  ;;  %916 = vrot.lane.b32.xlu1 %v4054_v56, %s2380_s9 }
  0xeb   : > { %914 = vrot.lane.b32.xlu0 %v4055_v59, %s2380_s9 }
  0xec   : > { %v667_v52 = vpop.permute.xlu1 %666 }
  0xed   : > { %748 = vst.msk [vmem:[#allocation2 + $0x78] sm:$0xff] %vm732_vm4, %v667_v52  ;;  %v665_v2 = vpop.permute.xlu0 %664 }
  0xee   : > { %747 = vst.msk [vmem:[#allocation2 + $0x70] sm:$0xff] %vm732_vm4, %v665_v2  ;;  %1046 = vrot.lane.b32.xlu1 %v2916_v5, %s2381_s10 }
  0xef   : > { %1044 = vrot.lane.b32.xlu0 %v2921_v27, %s2381_s10 }
  0xf0   : > { %v671_v47 = vpop.permute.xlu1 %670 }
  0xf1   : > { %750 = vst.msk [vmem:[#allocation2 + $0x88] sm:$0xff] %vm732_vm4, %v671_v47  ;;  %v669_v0 = vpop.permute.xlu0 %668 }
  0xf2   : > { %749 = vst.msk [vmem:[#allocation2 + $0x80] sm:$0xff] %vm732_vm4, %v669_v0  ;;  %1050 = vrot.lane.b32.xlu1 %v2929_v60, %s2381_s10 }
  0xf3   : > { %1048 = vrot.lane.b32.xlu0 %v2934_v36, %s2381_s10 }
  0xf4   : > { %v675_v11 = vpop.permute.xlu1 %674 }
  0xf5   : > { %752 = vst.msk [vmem:[#allocation2 + $0x98] sm:$0xff] %vm732_vm4, %v675_v11  ;;  %v673_v12 = vpop.permute.xlu0 %672 }
  0xf6   : > { %751 = vst.msk [vmem:[#allocation2 + $0x90] sm:$0xff] %vm732_vm4, %v673_v12  ;;  %1177 = vrot.lane.b32.xlu1 %v2527_v19, %s2382_s11 }
  0xf7   : > { %1175 = vrot.lane.b32.xlu0 %v2538_v23, %s2382_s11 }
  0xf8   : > { %v679_v5 = vpop.permute.xlu1 %678 }
  0xf9   : > { %754 = vst.msk [vmem:[#allocation2 + $0xa8] sm:$0xff] %vm732_vm4, %v679_v5  ;;  %v677_v27 = vpop.permute.xlu0 %676 }
  0xfa   : > { %753 = vst.msk [vmem:[#allocation2 + $0xa0] sm:$0xff] %vm732_vm4, %v677_v27  ;;  %1181 = vrot.lane.b32.xlu1 %v2541_v24, %s2382_s11  ;;  %v4056_v24 = vld [vmem:[#allocation16_spill] sm:$0xff] }
  0xfb   : > { %1179 = vrot.lane.b32.xlu0 %v2553_v28, %s2382_s11  ;;  %v4057_v28 = vld [vmem:[#allocation17_spill] sm:$0xff] }
  0xfc   : > { %v683_v1 = vpop.permute.xlu1 %682 }
  0xfd   : > { %756 = vst.msk [vmem:[#allocation2 + $0xb8] sm:$0xff] %vm732_vm4, %v683_v1  ;;  %v681_v16 = vpop.permute.xlu0 %680 }
  0xfe   : > { %755 = vst.msk [vmem:[#allocation2 + $0xb0] sm:$0xff] %vm732_vm4, %v681_v16  ;;  %1312 = vrot.lane.b32.xlu1 %v4054_v56, %s2383_s14  ;;  %v4060_v56 = vld [vmem:[#allocation38_spill] sm:$0xff] }
  0xff   : > { %1310 = vrot.lane.b32.xlu0 %v4055_v59, %s2383_s14 }
 0x100   : > { %v687_v19 = vpop.permute.xlu1 %686 }
 0x101   : > { %758 = vst.msk [vmem:[#allocation2 + $0xc8] sm:$0xff] %vm732_vm4, %v687_v19  ;;  %v685_v23 = vpop.permute.xlu0 %684  ;;  %v4063_v19 = vld [vmem:[#allocation22_spill] sm:$0xff] }
 0x102   : > { %757 = vst.msk [vmem:[#allocation2 + $0xc0] sm:$0xff] %vm732_vm4, %v685_v23  ;;  %1316 = vrot.lane.b32.xlu1 %v4056_v24, %s2383_s14  ;;  %v4064_v23 = vld [vmem:[#allocation23_spill] sm:$0xff] }
 0x103   : > { %1314 = vrot.lane.b32.xlu0 %v4057_v28, %s2383_s14 }
 0x104   : > { %v691_v18 = vpop.permute.xlu1 %690 }
 0x105   : > { %760 = vst.msk [vmem:[#allocation2 + $0xd8] sm:$0xff] %vm732_vm4, %v691_v18  ;;  %v689_v34 = vpop.permute.xlu0 %688 }
 0x106   : > { %759 = vst.msk [vmem:[#allocation2 + $0xd0] sm:$0xff] %vm732_vm4, %v689_v34  ;;  %1446 = vrot.lane.b32.xlu1 %v2929_v60, %s2384_s29 }
 0x107   : > { %1444 = vrot.lane.b32.xlu0 %v2934_v36, %s2384_s29 }
 0x108   : > { %v695_v33 = vpop.permute.xlu1 %694 }
 0x109   : > { %762 = vst.msk [vmem:[#allocation2 + $0xe8] sm:$0xff] %vm732_vm4, %v695_v33  ;;  %v693_v6 = vpop.permute.xlu0 %692 }
 0x10a   : > { %761 = vst.msk [vmem:[#allocation2 + $0xe0] sm:$0xff] %vm732_vm4, %v693_v6  ;;  %1450 = vrot.lane.b32.xlu1 %v2942_v14, %s2384_s29 }
 0x10b   : > { %1448 = vrot.lane.b32.xlu0 %v2947_v54, %s2384_s29 }
 0x10c   : > { %v699_v38 = vpop.permute.xlu1 %698 }
 0x10d   : > { %764 = vst.msk [vmem:[#allocation2 + $0xf8] sm:$0xff] %vm732_vm4, %v699_v38  ;;  %v697_v43 = vpop.permute.xlu0 %696  ;;  %v4065_v38 = vld [vmem:[#allocation6_spill] sm:$0xff] }
 0x10e   : > { %763 = vst.msk [vmem:[#allocation2 + $0xf0] sm:$0xff] %vm732_vm4, %v697_v43  ;;  %920 = vrot.lane.b32.xlu1 %v4056_v24, %s2380_s9 }
 0x10f   : > { %918 = vrot.lane.b32.xlu0 %v4057_v28, %s2380_s9 }
 0x110   : > { %v770_v60 = vpop.permute.xlu1 %769 }
 0x111   : > { %865 = vst.msk [vmem:[#allocation2 + $0x8] sm:$0xff] %vm863_vm6, %v770_v60  ;;  %v768_v36 = vpop.permute.xlu0 %767 }
 0x112   : > { %864 = vst.msk [vmem:[#allocation2] sm:$0xff] %vm863_vm6, %v768_v36  ;;  %924 = vrot.lane.b32.xlu1 %v4058_v3, %s2380_s9  ;;  %v4066_v36 = vld [vmem:[#allocation24_spill] sm:$0xff] }
 0x113   : > { %922 = vrot.lane.b32.xlu0 %v4059_v8, %s2380_s9 }
 0x114   : > { %v774_v13 = vpop.permute.xlu1 %773 }
 0x115   : > { %867 = vst.msk [vmem:[#allocation2 + $0x18] sm:$0xff] %vm863_vm6, %v774_v13  ;;  %v772_v20 = vpop.permute.xlu0 %771 }
 0x116   : > { %866 = vst.msk [vmem:[#allocation2 + $0x10] sm:$0xff] %vm863_vm6, %v772_v20  ;;  %1054 = vrot.lane.b32.xlu1 %v2942_v14, %s2381_s10 }
 0x117   : > { %1052 = vrot.lane.b32.xlu0 %v2947_v54, %s2381_s10 }
 0x118   : > { %v778_v49 = vpop.permute.xlu1 %777 }
 0x119   : > { %869 = vst.msk [vmem:[#allocation2 + $0x28] sm:$0xff] %vm863_vm6, %v778_v49  ;;  %v776_v15 = vpop.permute.xlu0 %775 }
 0x11a   : > { %868 = vst.msk [vmem:[#allocation2 + $0x20] sm:$0xff] %vm863_vm6, %v776_v15  ;;  %1058 = vrot.lane.b32.xlu1 %v2955_v39, %s2381_s10 }
 0x11b   : > { %1056 = vrot.lane.b32.xlu0 %v4060_v56, %s2381_s10 }
 0x11c   : > { %v782_v59 = vpop.permute.xlu1 %781 }
 0x11d   : > { %871 = vst.msk [vmem:[#allocation2 + $0x38] sm:$0xff] %vm863_vm6, %v782_v59  ;;  %v780_v52 = vpop.permute.xlu0 %779 }
 0x11e   : > { %870 = vst.msk [vmem:[#allocation2 + $0x30] sm:$0xff] %vm863_vm6, %v780_v52  ;;  %1185 = vrot.lane.b32.xlu1 %v2560_v29, %s2382_s11 }
 0x11f   : > { %1183 = vrot.lane.b32.xlu0 %v2563_v30, %s2382_s11 }
 0x120   : > { %v786_v14 = vpop.permute.xlu1 %785 }
 0x121   : > { %873 = vst.msk [vmem:[#allocation2 + $0x48] sm:$0xff] %vm863_vm6, %v786_v14  ;;  %v784_v54 = vpop.permute.xlu0 %783 }
 0x122   : > { %872 = vst.msk [vmem:[#allocation2 + $0x40] sm:$0xff] %vm863_vm6, %v784_v54  ;;  %1189 = vrot.lane.b32.xlu1 %v2570_v31, %s2382_s11  ;;  %v4061_v31 = vld [vmem:[#allocation20_spill] sm:$0xff] }
 0x123   : > { %1187 = vrot.lane.b32.xlu0 %v2573_v32, %s2382_s11  ;;  %v4062_v32 = vld [vmem:[#allocation21_spill] sm:$0xff] }
 0x124   : > { %v790_v2 = vpop.permute.xlu1 %789 }
 0x125   : > { %875 = vst.msk [vmem:[#allocation2 + $0x58] sm:$0xff] %vm863_vm6, %v790_v2  ;;  %v788_v47 = vpop.permute.xlu0 %787 }
 0x126   : > { %874 = vst.msk [vmem:[#allocation2 + $0x50] sm:$0xff] %vm863_vm6, %v788_v47  ;;  %1320 = vrot.lane.b32.xlu1 %v4058_v3, %s2383_s14  ;;  %v4067_v3 = vld [vmem:[#allocation25_spill] sm:$0xff] }
 0x127   : > { %1318 = vrot.lane.b32.xlu0 %v4059_v8, %s2383_s14 }
 0x128   : > { %v794_v29 = vpop.permute.xlu1 %793 }
 0x129   : > { %877 = vst.msk [vmem:[#allocation2 + $0x68] sm:$0xff] %vm863_vm6, %v794_v29  ;;  %v792_v30 = vpop.permute.xlu0 %791  ;;  %v4068_v29 = vld [vmem:[#allocation7_spill] sm:$0xff] }
 0x12a   : > { %876 = vst.msk [vmem:[#allocation2 + $0x60] sm:$0xff] %vm863_vm6, %v792_v30  ;;  %1324 = vrot.lane.b32.xlu1 %v4061_v31, %s2383_s14 }
 0x12b   : > { %1322 = vrot.lane.b32.xlu0 %v4062_v32, %s2383_s14 }
 0x12c   : > { %v798_v0 = vpop.permute.xlu1 %797 }
 0x12d   : > { %879 = vst.msk [vmem:[#allocation2 + $0x78] sm:$0xff] %vm863_vm6, %v798_v0  ;;  %v796_v11 = vpop.permute.xlu0 %795  ;;  %v4069_v0 = vld [vmem:[#allocation26_spill] sm:$0xff] }
 0x12e   : > { %878 = vst.msk [vmem:[#allocation2 + $0x70] sm:$0xff] %vm863_vm6, %v796_v11  ;;  %1454 = vrot.lane.b32.xlu1 %v2955_v39, %s2384_s29  ;;  %v4070_v11 = vld [vmem:[#allocation27_spill] sm:$0xff] }
 0x12f   : > { %1452 = vrot.lane.b32.xlu0 %v4060_v56, %s2384_s29 }
 0x130   : > { %v905_v12 = vpop.permute.xlu1 %904 }
 0x131   : > { %1000 = vst.msk [vmem:[#allocation2 + $0x8] sm:$0xff] %vm998_vm7, %v905_v12  ;;  %v903_v5 = vpop.permute.xlu0 %902 }
 0x132   : > { %999 = vst.msk [vmem:[#allocation2] sm:$0xff] %vm998_vm7, %v903_v5  ;;  %1458 = vrot.lane.b32.xlu1 %v2968_v61, %s2384_s29 }
 0x133   : > { %1456 = vrot.lane.b32.xlu0 %v2973_v22, %s2384_s29 }
 0x134   : > { %v909_v27 = vpop.permute.xlu1 %908 }
 0x135   : > { %1002 = vst.msk [vmem:[#allocation2 + $0x18] sm:$0xff] %vm998_vm7, %v909_v27  ;;  %v907_v39 = vpop.permute.xlu0 %906 }
 0x136   : > { %1001 = vst.msk [vmem:[#allocation2 + $0x10] sm:$0xff] %vm998_vm7, %v907_v39  ;;  %928 = vrot.lane.b32.xlu1 %v4061_v31, %s2380_s9 }
 0x137   : > { %926 = vrot.lane.b32.xlu0 %v4062_v32, %s2380_s9 }
 0x138   : > { %v1039_v1 = vpop.permute.xlu1 %1038 }
 0x139   : > { %1134 = vst.msk [vmem:[#allocation2 + $0x8] sm:$0xff] %vm1132_vm8, %v1039_v1  ;;  %v1037_v16 = vpop.permute.xlu0 %1036 }
 0x13a   : > { %1133 = vst.msk [vmem:[#allocation2] sm:$0xff] %vm1132_vm8, %v1037_v16  ;;  %932 = vrot.lane.b32.xlu1 %v4063_v19, %s2380_s9 }
 0x13b   : > { %930 = vrot.lane.b32.xlu0 %v4064_v23, %s2380_s9 }
 0x13c   : > { %v1043_v24 = vpop.permute.xlu1 %1042 }
 0x13d   : > { %1136 = vst.msk [vmem:[#allocation2 + $0x18] sm:$0xff] %vm1132_vm8, %v1043_v24  ;;  %v1041_v28 = vpop.permute.xlu0 %1040 }
 0x13e   : > { %1135 = vst.msk [vmem:[#allocation2 + $0x10] sm:$0xff] %vm1132_vm8, %v1041_v28  ;;  %1062 = vrot.lane.b32.xlu1 %v2968_v61, %s2381_s10 }
 0x13f   : > { %1060 = vrot.lane.b32.xlu0 %v2973_v22, %s2381_s10 }
 0x140   : > { %v1170_v18 = vpop.permute.xlu1 %1169 }
 0x141   : > { %1265 = vst.msk [vmem:[#allocation2 + $0x8] sm:$0xff] %vm1263_vm9, %v1170_v18  ;;  %v1168_v34 = vpop.permute.xlu0 %1167 }
 0x142   : > { %1264 = vst.msk [vmem:[#allocation2] sm:$0xff] %vm1263_vm9, %v1168_v34  ;;  %1066 = vrot.lane.b32.xlu1 %v2981_v10, %s2381_s10 }
 0x143   : > { %1064 = vrot.lane.b32.xlu0 %v2986_v48, %s2381_s10 }
 0x144   : > { %v1174_v33 = vpop.permute.xlu1 %1173 }
 0x145   : > { %1267 = vst.msk [vmem:[#allocation2 + $0x18] sm:$0xff] %vm1263_vm9, %v1174_v33  ;;  %v1172_v61 = vpop.permute.xlu0 %1171  ;;  %v4072_v33 = vld [vmem:[#allocation28_spill] sm:$0xff] }
 0x146   : > { %1266 = vst.msk [vmem:[#allocation2 + $0x10] sm:$0xff] %vm1263_vm9, %v1172_v61  ;;  %1193 = vrot.lane.b32.xlu1 %v2589_v37, %s2382_s11 }
 0x147   : > { %1191 = vrot.lane.b32.xlu0 %v2600_v40, %s2382_s11 }
 0x148   : > { %v1305_v22 = vpop.permute.xlu1 %1304 }
 0x149   : > { %1400 = vst.msk [vmem:[#allocation2 + $0x8] sm:$0xff] %vm1398_vm10, %v1305_v22  ;;  %v1303_v6 = vpop.permute.xlu0 %1302  ;;  %v4073_v22 = vld [vmem:[#allocation29_spill] sm:$0xff] }
 0x14a   : > { %1399 = vst.msk [vmem:[#allocation2] sm:$0xff] %vm1398_vm10, %v1303_v6  ;;  %1197 = vrot.lane.b32.xlu1 %v4065_v38, %s2382_s11 }
 0x14b   : > { %1195 = vrot.lane.b32.xlu0 %v2606_v42, %s2382_s11 }
 0x14c   : > { %v1309_v43 = vpop.permute.xlu1 %1308 }
 0x14d   : > { %1402 = vst.msk [vmem:[#allocation2 + $0x18] sm:$0xff] %vm1398_vm10, %v1309_v43  ;;  %v1307_v37 = vpop.permute.xlu0 %1306 }
 0x14e   : > { %1401 = vst.msk [vmem:[#allocation2 + $0x10] sm:$0xff] %vm1398_vm10, %v1307_v37  ;;  %1328 = vrot.lane.b32.xlu1 %v4063_v19, %s2383_s14  ;;  %v4071_v19 = vld [vmem:[#allocation8_spill] sm:$0xff] }
 0x14f   : > { %1326 = vrot.lane.b32.xlu0 %v4064_v23, %s2383_s14 }
 0x150   : > { %v1439_v40 = vpop.permute.xlu1 %1438 }
 0x151   : > { %1534 = vst.msk [vmem:[#allocation2 + $0x8] sm:$0xff] %vm1532_vm11, %v1439_v40  ;;  %v1437_v60 = vpop.permute.xlu0 %1436 }
 0x152   : > { %1533 = vst.msk [vmem:[#allocation2] sm:$0xff] %vm1532_vm11, %v1437_v60  ;;  %1332 = vrot.lane.b32.xlu1 %v4066_v36, %s2383_s14 }
 0x153   : > { %1330 = vrot.lane.b32.xlu0 %v4067_v3, %s2383_s14 }
 0x154   : > { %v1443_v8 = vpop.permute.xlu1 %1442 }
 0x155   : > { %1536 = vst.msk [vmem:[#allocation2 + $0x18] sm:$0xff] %vm1532_vm11, %v1443_v8  ;;  %v1441_v13 = vpop.permute.xlu0 %1440 }
 0x156   : > { %1535 = vst.msk [vmem:[#allocation2 + $0x10] sm:$0xff] %vm1532_vm11, %v1441_v13  ;;  %1462 = vrot.lane.b32.xlu1 %v2981_v10, %s2384_s29  ;;  %v4074_v13 = vld [vmem:[#allocation9_spill] sm:$0xff] }
 0x157   : > { %1460 = vrot.lane.b32.xlu0 %v2986_v48, %s2384_s29 }
 0x158   : > { %v913_v20 = vpop.permute.xlu1 %912  ;;  %v1566_v49 = vld [vmem:[#allocation2 + $0x8] sm:$0xff] }
 0x159   : > { %1004 = vst.msk [vmem:[#allocation2 + $0x28] sm:$0xff] %vm998_vm7, %v913_v20  ;;  %v911_v15 = vpop.permute.xlu0 %910  ;;  %v1565_v56 = vld [vmem:[#allocation2] sm:$0xff] }
 0x15a   : > { %1003 = vst.msk [vmem:[#allocation2 + $0x20] sm:$0xff] %vm998_vm7, %v911_v15  ;;  %1466 = vrot.lane.b32.xlu1 %v2994_v7, %s2384_s29  ;;  %v1597_v59 = vpack.c.bf16 %v1566_v49, %v1565_v56  ;;  %v4075_v56 = vld [vmem:[#allocation30_spill] sm:$0xff] }
 0x15b   : > { %1464 = vrot.lane.b32.xlu0 %v2999_v9, %s2384_s29 }
 0x15c   : > { %2224 = vmatprep.mubr.msk.bf16.mxu0 %vm1640_vm12, %v1597_v59  ;;  %v917_v10 = vpop.permute.xlu1 %916  ;;  %v1568_v48 = vld [vmem:[#allocation2 + $0x18] sm:$0xff]  ;;  %v4076_v59 = vld [vmem:[#allocation31_spill] sm:$0xff] }
 0x15d   : > { %1006 = vst.msk [vmem:[#allocation2 + $0x38] sm:$0xff] %vm998_vm7, %v917_v10  ;;  %v915_v52 = vpop.permute.xlu0 %914  ;;  %v1567_v14 = vld [vmem:[#allocation2 + $0x10] sm:$0xff] }
 0x15e   : > { %1005 = vst.msk [vmem:[#allocation2 + $0x30] sm:$0xff] %vm998_vm7, %v915_v52  ;;  %801 = vrot.lane.b32.xlu1 %v4065_v38, %s2379_s8  ;;  %v1598_v54 = vpack.c.bf16 %v1568_v48, %v1567_v14 }
 0x15f   : > { %799 = vrot.lane.b32.xlu0 %v2606_v42, %s2379_s8 }
 0x160   : > { %2225 = vmatmul.mubr.msk.bf16.vlgmr.msra.gmra.mxu0 %vm1640_vm12, %v1598_v54  ;;  %v1047_v2 = vpop.permute.xlu1 %1046 }
 0x161   : > { %1138 = vst.msk [vmem:[#allocation2 + $0x28] sm:$0xff] %vm1132_vm8, %v1047_v2  ;;  %v1045_v47 = vpop.permute.xlu0 %1044 }
 0x162   : > { %1137 = vst.msk [vmem:[#allocation2 + $0x20] sm:$0xff] %vm1132_vm8, %v1045_v47  ;;  %805 = vrot.lane.b32.xlu1 %v4068_v29, %s2379_s8 }
 0x163   : > { %803 = vrot.lane.b32.xlu0 %v2614_v44, %s2379_s8 }
 0x164   : > { %v1051_v30 = vpop.permute.xlu1 %1050 }
 0x165   : > { %1140 = vst.msk [vmem:[#allocation2 + $0x38] sm:$0xff] %vm1132_vm8, %v1051_v30  ;;  %v1049_v31 = vpop.permute.xlu0 %1048  ;;  %v4077_v30 = vld [vmem:[#allocation11_spill] sm:$0xff] }
 0x166   : > { %1139 = vst.msk [vmem:[#allocation2 + $0x30] sm:$0xff] %vm1132_vm8, %v1049_v31  ;;  %936 = vrot.lane.b32.xlu1 %v4066_v36, %s2380_s9 }
 0x167   : > { %934 = vrot.lane.b32.xlu0 %v4067_v3, %s2380_s9 }
 0x168   : > { %v1178_v42 = vpop.permute.xlu1 %1177 }
 0x169   : > { %1269 = vst.msk [vmem:[#allocation2 + $0x28] sm:$0xff] %vm1263_vm9, %v1178_v42  ;;  %v1176_v32 = vpop.permute.xlu0 %1175  ;;  %v4078_v42 = vld [vmem:[#allocation12_spill] sm:$0xff] }
 0x16a   : > { %1268 = vst.msk [vmem:[#allocation2 + $0x20] sm:$0xff] %vm1263_vm9, %v1176_v32  ;;  %940 = vrot.lane.b32.xlu1 %v4069_v0, %s2380_s9 }
 0x16b   : > { %938 = vrot.lane.b32.xlu0 %v4070_v11, %s2380_s9 }
 0x16c   : > { %v1182_v12 = vpop.permute.xlu1 %1181 }
 0x16d   : > { %1271 = vst.msk [vmem:[#allocation2 + $0x38] sm:$0xff] %vm1263_vm9, %v1182_v12  ;;  %v1180_v5 = vpop.permute.xlu0 %1179 }
 0x16e   : > { %1270 = vst.msk [vmem:[#allocation2 + $0x30] sm:$0xff] %vm1263_vm9, %v1180_v5  ;;  %1070 = vrot.lane.b32.xlu1 %v2994_v7, %s2381_s10 }
 0x16f   : > { %1068 = vrot.lane.b32.xlu0 %v2999_v9, %s2381_s10 }
 0x170   : > { %v1313_v27 = vpop.permute.xlu1 %1312 }
 0x171   : > { %1404 = vst.msk [vmem:[#allocation2 + $0x28] sm:$0xff] %vm1398_vm10, %v1313_v27  ;;  %v1311_v39 = vpop.permute.xlu0 %1310 }
 0x172   : > { %1403 = vst.msk [vmem:[#allocation2 + $0x20] sm:$0xff] %vm1398_vm10, %v1311_v39  ;;  %1074 = vrot.lane.b32.xlu1 %v3007_v26, %s2381_s10  ;;  %v4079_v39 = vld [vmem:[#allocation32_spill] sm:$0xff] }
 0x173   : > { %1072 = vrot.lane.b32.xlu0 %v3012_v35, %s2381_s10 }
 0x174   : > { %v1317_v1 = vpop.permute.xlu1 %1316 }
 0x175   : > { %1406 = vst.msk [vmem:[#allocation2 + $0x38] sm:$0xff] %vm1398_vm10, %v1317_v1  ;;  %v1315_v16 = vpop.permute.xlu0 %1314  ;;  %v4080_v1 = vld [vmem:[#allocation33_spill] sm:$0xff] }
 0x176   : > { %1405 = vst.msk [vmem:[#allocation2 + $0x30] sm:$0xff] %vm1398_vm10, %v1315_v16  ;;  %1201 = vrot.lane.b32.xlu1 %v4068_v29, %s2382_s11 }
 0x177   : > { %1199 = vrot.lane.b32.xlu0 %v2614_v44, %s2382_s11 }
 0x178   : > { %v1447_v7 = vpop.permute.xlu1 %1446 }
 0x179   : > { %1538 = vst.msk [vmem:[#allocation2 + $0x28] sm:$0xff] %vm1532_vm11, %v1447_v7  ;;  %v1445_v9 = vpop.permute.xlu0 %1444 }
 0x17a   : > { %1537 = vst.msk [vmem:[#allocation2 + $0x20] sm:$0xff] %vm1532_vm11, %v1445_v9  ;;  %1205 = vrot.lane.b32.xlu1 %v4071_v19, %s2382_s11 }
 0x17b   : > { %1203 = vrot.lane.b32.xlu0 %v2628_v46, %s2382_s11 }
 0x17c   : > { %v1451_v23 = vpop.permute.xlu1 %1450 }
 0x17d   : > { %1540 = vst.msk [vmem:[#allocation2 + $0x38] sm:$0xff] %vm1532_vm11, %v1451_v23  ;;  %v1449_v24 = vpop.permute.xlu0 %1448 }
 0x17e   : > { %1539 = vst.msk [vmem:[#allocation2 + $0x30] sm:$0xff] %vm1532_vm11, %v1449_v24  ;;  %1336 = vrot.lane.b32.xlu1 %v4069_v0, %s2383_s14 }
 0x17f   : > { %1334 = vrot.lane.b32.xlu0 %v4070_v11, %s2383_s14 }
 0x180   : > { %v921_v44 = vpop.permute.xlu1 %920  ;;  %v1570_v28 = vld [vmem:[#allocation2 + $0x28] sm:$0xff] }
 0x181   : > { %1008 = vst.msk [vmem:[#allocation2 + $0x48] sm:$0xff] %vm998_vm7, %v921_v44  ;;  %v919_v18 = vpop.permute.xlu0 %918  ;;  %v1569_v34 = vld [vmem:[#allocation2 + $0x20] sm:$0xff] }
 0x182   : > { %1007 = vst.msk [vmem:[#allocation2 + $0x40] sm:$0xff] %vm998_vm7, %v919_v18  ;;  %1340 = vrot.lane.b32.xlu1 %v4072_v33, %s2383_s14  ;;  %v1599_v61 = vpack.c.bf16 %v1570_v28, %v1569_v34  ;;  %v4081_v44 = vld [vmem:[#allocation13_spill] sm:$0xff] }
 0x183   : > { %1338 = vrot.lane.b32.xlu0 %v4073_v22, %s2383_s14 }
 0x184   : > { %2228 = vmatprep.mubr.msk.bf16.mxu0 %vm1640_vm12, %v1599_v61  ;;  %v925_v6 = vpop.permute.xlu1 %924  ;;  %v1572_v38 = vld [vmem:[#allocation2 + $0x38] sm:$0xff]  ;;  %v4082_v61 = vld [vmem:[#allocation34_spill] sm:$0xff] }
 0x185   : > { %1010 = vst.msk [vmem:[#allocation2 + $0x58] sm:$0xff] %vm998_vm7, %v925_v6  ;;  %v923_v43 = vpop.permute.xlu0 %922  ;;  %v1571_v37 = vld [vmem:[#allocation2 + $0x30] sm:$0xff] }
 0x186   : > { %1009 = vst.msk [vmem:[#allocation2 + $0x50] sm:$0xff] %vm998_vm7, %v923_v43  ;;  %1470 = vrot.lane.b32.xlu1 %v3007_v26, %s2384_s29  ;;  %v1600_v40 = vpack.c.bf16 %v1572_v38, %v1571_v37 }
 0x187   : > { %1468 = vrot.lane.b32.xlu0 %v3012_v35, %s2384_s29 }
 0x188   : > { %2229 = vmatmul.mubr.msk.bf16.gmra.mxu0 %vm1640_vm12, %v1600_v40  ;;  %v1055_v60 = vpop.permute.xlu1 %1054 }
 0x189   : > { %1142 = vst.msk [vmem:[#allocation2 + $0x48] sm:$0xff] %vm1132_vm8, %v1055_v60  ;;  %v1053_v36 = vpop.permute.xlu0 %1052 }
 0x18a   : > { %1141 = vst.msk [vmem:[#allocation2 + $0x40] sm:$0xff] %vm1132_vm8, %v1053_v36  ;;  %1474 = vrot.lane.b32.xlu1 %v3020_v4, %s2384_s29 }
 0x18b   : > { %1472 = vrot.lane.b32.xlu0 %v3025_v25, %s2384_s29 }
 0x18c   : > { %v1059_v3 = vpop.permute.xlu1 %1058 }
 0x18d   : > { %1144 = vst.msk [vmem:[#allocation2 + $0x58] sm:$0xff] %vm1132_vm8, %v1059_v3  ;;  %v1057_v26 = vpop.permute.xlu0 %1056 }
 0x18e   : > { %1143 = vst.msk [vmem:[#allocation2 + $0x50] sm:$0xff] %vm1132_vm8, %v1057_v26  ;;  %809 = vrot.lane.b32.xlu1 %v4071_v19, %s2379_s8 }
 0x18f   : > { %807 = vrot.lane.b32.xlu0 %v2628_v46, %s2379_s8 }
 0x190   : > { %v1186_v35 = vpop.permute.xlu1 %1185 }
 0x191   : > { %1273 = vst.msk [vmem:[#allocation2 + $0x48] sm:$0xff] %vm1263_vm9, %v1186_v35  ;;  %v1184_v8 = vpop.permute.xlu0 %1183 }
 0x192   : > { %1272 = vst.msk [vmem:[#allocation2 + $0x40] sm:$0xff] %vm1263_vm9, %v1184_v8  ;;  %813 = vrot.lane.b32.xlu1 %v4074_v13, %s2379_s8 }
 0x193   : > { %811 = vrot.lane.b32.xlu0 %v2645_v51, %s2379_s8 }
 0x194   : > { %v1190_v20 = vpop.permute.xlu1 %1189 }
 0x195   : > { %1275 = vst.msk [vmem:[#allocation2 + $0x58] sm:$0xff] %vm1263_vm9, %v1190_v20  ;;  %v1188_v49 = vpop.permute.xlu0 %1187 }
 0x196   : > { %1274 = vst.msk [vmem:[#allocation2 + $0x50] sm:$0xff] %vm1263_vm9, %v1188_v49  ;;  %944 = vrot.lane.b32.xlu1 %v4072_v33, %s2380_s9 }
 0x197   : > { %942 = vrot.lane.b32.xlu0 %v4073_v22, %s2380_s9  ;;  %v4083_v22 = vld [vmem:[#allocation35_spill] sm:$0xff] }
 0x198   : > { %v1321_v46 = vpop.permute.xlu1 %1320 }
 0x199   : > { %1408 = vst.msk [vmem:[#allocation2 + $0x48] sm:$0xff] %vm1398_vm10, %v1321_v46  ;;  %v1319_v15 = vpop.permute.xlu0 %1318 }
 0x19a   : > { %1407 = vst.msk [vmem:[#allocation2 + $0x40] sm:$0xff] %vm1398_vm10, %v1319_v15  ;;  %948 = vrot.lane.b32.xlu1 %v4075_v56, %s2380_s9  ;;  %v4084_v15 = vld [vmem:[#allocation36_spill] sm:$0xff] }
 0x19b   : > { %946 = vrot.lane.b32.xlu0 %v4076_v59, %s2380_s9 }
 0x19c   : > { %v1325_v10 = vpop.permute.xlu1 %1324 }
 0x19d   : > { %1410 = vst.msk [vmem:[#allocation2 + $0x58] sm:$0xff] %vm1398_vm10, %v1325_v10  ;;  %v1323_v48 = vpop.permute.xlu0 %1322 }
 0x19e   : > { %1409 = vst.msk [vmem:[#allocation2 + $0x50] sm:$0xff] %vm1398_vm10, %v1323_v48  ;;  %1078 = vrot.lane.b32.xlu1 %v3020_v4, %s2381_s10 }
 0x19f   : > { %1076 = vrot.lane.b32.xlu0 %v3025_v25, %s2381_s10 }
 0x1a0   : > { %v1455_v52 = vpop.permute.xlu1 %1454 }
 0x1a1   : > { %1542 = vst.msk [vmem:[#allocation2 + $0x48] sm:$0xff] %vm1532_vm11, %v1455_v52  ;;  %v1453_v14 = vpop.permute.xlu0 %1452 }
 0x1a2   : > { %1541 = vst.msk [vmem:[#allocation2 + $0x40] sm:$0xff] %vm1532_vm11, %v1453_v14  ;;  %1082 = vrot.lane.b32.xlu1 %v3033_v53, %s2381_s10 }
 0x1a3   : > { %1080 = vrot.lane.b32.xlu0 %v3038_v17, %s2381_s10 }
 0x1a4   : > { %v1459_v54 = vpop.permute.xlu1 %1458 }
 0x1a5   : > { %1544 = vst.msk [vmem:[#allocation2 + $0x58] sm:$0xff] %vm1532_vm11, %v1459_v54  ;;  %v1457_v2 = vpop.permute.xlu0 %1456 }
 0x1a6   : > { %1543 = vst.msk [vmem:[#allocation2 + $0x50] sm:$0xff] %vm1532_vm11, %v1457_v2  ;;  %1209 = vrot.lane.b32.xlu1 %v4074_v13, %s2382_s11  ;;  %v258_v2 = vld [vmem:[%s2467_s5 + $0x180] sm:$0xff] }
 0x1a7   : > { %1207 = vrot.lane.b32.xlu0 %v2645_v51, %s2382_s11 }
 0x1a8   : > { %v929_v4 = vpop.permute.xlu1 %928  ;;  %v1574_v25 = vld [vmem:[#allocation2 + $0x48] sm:$0xff] }
 0x1a9   : > { %1012 = vst.msk [vmem:[#allocation2 + $0x68] sm:$0xff] %vm998_vm7, %v929_v4  ;;  %v927_v47 = vpop.permute.xlu0 %926  ;;  %v1573_v29 = vld [vmem:[#allocation2 + $0x40] sm:$0xff]  ;;  %v260_v4 = vld [vmem:[%s2467_s5 + $0x190] sm:$0x3] }
 0x1aa   : > { %1011 = vst.msk [vmem:[#allocation2 + $0x60] sm:$0xff] %vm998_vm7, %v927_v47  ;;  %1213 = vrot.lane.b32.xlu1 %v4077_v30, %s2382_s11  ;;  %v1601_v31 = vpack.c.bf16 %v1574_v25, %v1573_v29  ;;  %v900_v29 = vrot.slane %v260_v4, 1 }
 0x1ab   : > { %1211 = vrot.lane.b32.xlu0 %v4078_v42, %s2382_s11 }
 0x1ac   : > { %2232 = vmatprep.mubr.msk.bf16.mxu0 %vm1640_vm12, %v1601_v31  ;;  %v933_v32 = vpop.permute.xlu1 %932  ;;  %v1576_v0 = vld [vmem:[#allocation2 + $0x58] sm:$0xff] }
 0x1ad   : > { %1014 = vst.msk [vmem:[#allocation2 + $0x78] sm:$0xff] %vm998_vm7, %v933_v32  ;;  %v931_v51 = vpop.permute.xlu0 %930  ;;  %v1575_v11 = vld [vmem:[#allocation2 + $0x50] sm:$0xff] }
 0x1ae   : > { %1013 = vst.msk [vmem:[#allocation2 + $0x70] sm:$0xff] %vm998_vm7, %v931_v51  ;;  %1344 = vrot.lane.b32.xlu1 %v4075_v56, %s2383_s14  ;;  %v1602_v12 = vpack.c.bf16 %v1576_v0, %v1575_v11  ;;  %v4085_v56 = vld [vmem:[#allocation37_spill] sm:$0xff]  ;;  %v1034_v11 = vrot.slane %v260_v4, 2 }
 0x1af   : > { %1342 = vrot.lane.b32.xlu0 %v4076_v59, %s2383_s14 }
 0x1b0   : > { %2233 = vmatmul.mubr.msk.bf16.gmra.mxu0 %vm1640_vm12, %v1602_v12  ;;  %v1063_v5 = vpop.permute.xlu1 %1062  ;;  %v1031_v12 = vrot.slane %v258_v2, 2 }
 0x1b1   : > { %1146 = vst.msk [vmem:[#allocation2 + $0x68] sm:$0xff] %vm1132_vm8, %v1063_v5  ;;  %v1061_v27 = vpop.permute.xlu0 %1060 }
 0x1b2   : > { %1145 = vst.msk [vmem:[#allocation2 + $0x60] sm:$0xff] %vm1132_vm8, %v1061_v27  ;;  %1348 = vrot.lane.b32.xlu1 %v4079_v39, %s2383_s14 }
 0x1b3   : > { %1346 = vrot.lane.b32.xlu0 %v4080_v1, %s2383_s14 }
 0x1b4   : > { %v1067_v16 = vpop.permute.xlu1 %1066 }
 0x1b5   : > { %1148 = vst.msk [vmem:[#allocation2 + $0x78] sm:$0xff] %vm1132_vm8, %v1067_v16  ;;  %v1065_v7 = vpop.permute.xlu0 %1064 }
 0x1b6   : > { %1147 = vst.msk [vmem:[#allocation2 + $0x70] sm:$0xff] %vm1132_vm8, %v1065_v7  ;;  %1478 = vrot.lane.b32.xlu1 %v3033_v53, %s2384_s29 }
 0x1b7   : > { %1476 = vrot.lane.b32.xlu0 %v3038_v17, %s2384_s29 }
 0x1b8   : > { %v1194_v9 = vpop.permute.xlu1 %1193 }
 0x1b9   : > { %1277 = vst.msk [vmem:[#allocation2 + $0x68] sm:$0xff] %vm1263_vm9, %v1194_v9  ;;  %v1192_v19 = vpop.permute.xlu0 %1191 }
 0x1ba   : > { %1276 = vst.msk [vmem:[#allocation2 + $0x60] sm:$0xff] %vm1263_vm9, %v1192_v19  ;;  %1482 = vrot.lane.b32.xlu1 %v3046_v21, %s2384_s29 }
 0x1bb   : > { %1480 = vrot.lane.b32.xlu0 %v3051_v41, %s2384_s29 }
 0x1bc   : > { %v1198_v23 = vpop.permute.xlu1 %1197 }
 0x1bd   : > { %1279 = vst.msk [vmem:[#allocation2 + $0x78] sm:$0xff] %vm1263_vm9, %v1198_v23  ;;  %v1196_v24 = vpop.permute.xlu0 %1195 }
 0x1be   : > { %1278 = vst.msk [vmem:[#allocation2 + $0x70] sm:$0xff] %vm1263_vm9, %v1196_v24  ;;  %817 = vrot.lane.b32.xlu1 %v4077_v30, %s2379_s8  ;;  %v897_v30 = vrot.slane %v258_v2, 1 }
 0x1bf   : > { %815 = vrot.lane.b32.xlu0 %v4078_v42, %s2379_s8 }
 0x1c0   : > { %v1329_v53 = vpop.permute.xlu1 %1328 }
 0x1c1   : > { %1412 = vst.msk [vmem:[#allocation2 + $0x68] sm:$0xff] %vm1398_vm10, %v1329_v53  ;;  %v1327_v17 = vpop.permute.xlu0 %1326 }
 0x1c2   : > { %1411 = vst.msk [vmem:[#allocation2 + $0x60] sm:$0xff] %vm1398_vm10, %v1327_v17  ;;  %821 = vrot.lane.b32.xlu1 %v2673_v57, %s2379_s8 }
 0x1c3   : > { %819 = vrot.lane.b32.xlu0 %v4081_v44, %s2379_s8 }
 0x1c4   : > { %v1333_v28 = vpop.permute.xlu1 %1332 }
 0x1c5   : > { %1414 = vst.msk [vmem:[#allocation2 + $0x78] sm:$0xff] %vm1398_vm10, %v1333_v28  ;;  %v1331_v18 = vpop.permute.xlu0 %1330 }
 0x1c6   : > { %1413 = vst.msk [vmem:[#allocation2 + $0x70] sm:$0xff] %vm1398_vm10, %v1331_v18  ;;  %952 = vrot.lane.b32.xlu1 %v4079_v39, %s2380_s9  ;;  %v261_v18 = vld [vmem:[%s2467_s5 + $0x198] sm:$0xff] }
 0x1c7   : > { %950 = vrot.lane.b32.xlu0 %v4080_v1, %s2380_s9 }
 0x1c8   : > { %v1463_v34 = vpop.permute.xlu1 %1462 }
 0x1c9   : > { %1546 = vst.msk [vmem:[#allocation2 + $0x68] sm:$0xff] %vm1532_vm11, %v1463_v34  ;;  %v1461_v33 = vpop.permute.xlu0 %1460  ;;  %v263_v34 = vld [vmem:[%s2467_s5 + $0x1a8] sm:$0x3] }
 0x1ca   : > { %1545 = vst.msk [vmem:[#allocation2 + $0x60] sm:$0xff] %vm1532_vm11, %v1461_v33  ;;  %956 = vrot.lane.b32.xlu1 %v4082_v61, %s2380_s9 }
 0x1cb   : > { %954 = vrot.lane.b32.xlu0 %v4083_v22, %s2380_s9 }
 0x1cc   : > { %v1467_v6 = vpop.permute.xlu1 %1466 }
 0x1cd   : > { %1548 = vst.msk [vmem:[#allocation2 + $0x78] sm:$0xff] %vm1532_vm11, %v1467_v6  ;;  %v1465_v38 = vpop.permute.xlu0 %1464  ;;  %v1297_v6 = vrot.slane %v261_v18, 1 }
 0x1ce   : > { %1547 = vst.msk [vmem:[#allocation2 + $0x70] sm:$0xff] %vm1532_vm11, %v1465_v38  ;;  %1086 = vrot.lane.b32.xlu1 %v3046_v21, %s2381_s10 }
 0x1cf   : > { %1084 = vrot.lane.b32.xlu0 %v3051_v41, %s2381_s10 }
 0x1d0   : > { %v802_v43 = vpop.permute.xlu1 %801  ;;  %v1578_v37 = vld [vmem:[#allocation2 + $0x68] sm:$0xff] }
 0x1d1   : > { %881 = vst.msk [vmem:[#allocation2 + $0x88] sm:$0xff] %vm863_vm6, %v802_v43  ;;  %v800_v40 = vpop.permute.xlu0 %799  ;;  %v1577_v60 = vld [vmem:[#allocation2 + $0x60] sm:$0xff] }
 0x1d2   : > { %880 = vst.msk [vmem:[#allocation2 + $0x80] sm:$0xff] %vm863_vm6, %v800_v40  ;;  %1090 = vrot.lane.b32.xlu1 %v3061_v50, %s2381_s10  ;;  %v1603_v36 = vpack.c.bf16 %v1578_v37, %v1577_v60 }
 0x1d3   : > { %1088 = vrot.lane.b32.xlu0 %v3066_v58, %s2381_s10 }
 0x1d4   : > { %2236 = vmatprep.mubr.msk.bf16.mxu0 %vm1640_vm12, %v1603_v36  ;;  %v806_v21 = vpop.permute.xlu1 %805  ;;  %v1580_v3 = vld [vmem:[#allocation2 + $0x78] sm:$0xff] }
 0x1d5   : > { %883 = vst.msk [vmem:[#allocation2 + $0x98] sm:$0xff] %vm863_vm6, %v806_v21  ;;  %v804_v41 = vpop.permute.xlu0 %803  ;;  %v1579_v26 = vld [vmem:[#allocation2 + $0x70] sm:$0xff] }
 0x1d6   : > { %882 = vst.msk [vmem:[#allocation2 + $0x90] sm:$0xff] %vm863_vm6, %v804_v41  ;;  %1217 = vrot.lane.b32.xlu1 %v2673_v57, %s2382_s11  ;;  %v1604_v35 = vpack.c.bf16 %v1580_v3, %v1579_v26  ;;  %v1434_v3 = vrot.slane %v263_v34, 2  ;;  %v1431_v41 = vrot.slane %v261_v18, 2 }
 0x1d7   : > { %1215 = vrot.lane.b32.xlu0 %v4081_v44, %s2382_s11  ;;  %v262_v44 = vld [vmem:[%s2467_s5 + $0x1a0] sm:$0xff] }
 0x1d8   : > { %2237 = vmatmul.mubr.msk.bf16.gmra.mxu0 %vm1640_vm12, %v1604_v35  ;;  %v937_v8 = vpop.permute.xlu1 %936  ;;  %v1432_v21 = vrot.slane %v262_v44, 2 }
 0x1d9   : > { %1016 = vst.msk [vmem:[#allocation2 + $0x88] sm:$0xff] %vm998_vm7, %v937_v8  ;;  %v935_v13 = vpop.permute.xlu0 %934 }
 0x1da   : > { %1015 = vst.msk [vmem:[#allocation2 + $0x80] sm:$0xff] %vm998_vm7, %v935_v13  ;;  %1221 = vrot.lane.b32.xlu1 %v2688_v62, %s2382_s11  ;;  %v1435_v8 = vsel %vm555_vm2, %v1432_v21, %v1434_v3 }
 0x1db   : > { %1219 = vrot.lane.b32.xlu0 %v2691_v63, %s2382_s11 }
 0x1dc   : > { %v941_v20 = vpop.permute.xlu1 %940 }
 0x1dd   : > { %1018 = vst.msk [vmem:[#allocation2 + $0x98] sm:$0xff] %vm998_vm7, %v941_v20  ;;  %v939_v57 = vpop.permute.xlu0 %938  ;;  %v1433_v20 = vsel %vm555_vm2, %v1431_v41, %v1432_v21 }
 0x1de   : > { %1017 = vst.msk [vmem:[#allocation2 + $0x90] sm:$0xff] %vm998_vm7, %v939_v57  ;;  %1352 = vrot.lane.b32.xlu1 %v4082_v61, %s2383_s14  ;;  %v1298_v61 = vrot.slane %v262_v44, 1 }
 0x1df   : > { %1350 = vrot.lane.b32.xlu0 %v4083_v22, %s2383_s14  ;;  %v1300_v22 = vrot.slane %v263_v34, 1 }
 0x1e0   : > { %v1071_v49 = vpop.permute.xlu1 %1070  ;;  %v1299_v60 = vsel %vm345_vm1, %v1297_v6, %v1298_v61 }
 0x1e1   : > { %1150 = vst.msk [vmem:[#allocation2 + $0x88] sm:$0xff] %vm1132_vm8, %v1071_v49  ;;  %v1069_v46 = vpop.permute.xlu0 %1068  ;;  %v1301_v37 = vsel %vm345_vm1, %v1298_v61, %v1300_v22 }
 0x1e2   : > { %1149 = vst.msk [vmem:[#allocation2 + $0x80] sm:$0xff] %vm1132_vm8, %v1069_v46  ;;  %1356 = vrot.lane.b32.xlu1 %v4084_v15, %s2383_s14 }
 0x1e3   : > { %1354 = vrot.lane.b32.xlu0 %v4085_v56, %s2383_s14 }
 0x1e4   : > { %v1075_v59 = vpop.permute.xlu1 %1074 }
 0x1e5   : > { %1152 = vst.msk [vmem:[#allocation2 + $0x98] sm:$0xff] %vm1132_vm8, %v1075_v59  ;;  %v1073_v10 = vpop.permute.xlu0 %1072 }
 0x1e6   : > { %1151 = vst.msk [vmem:[#allocation2 + $0x90] sm:$0xff] %vm1132_vm8, %v1073_v10  ;;  %1486 = vrot.lane.b32.xlu1 %v3061_v50, %s2384_s29 }
 0x1e7   : > { %1484 = vrot.lane.b32.xlu0 %v3066_v58, %s2384_s29  ;;  %v259_v58 = vld [vmem:[%s2467_s5 + $0x188] sm:$0xff] }
 0x1e8   : > { %v1202_v48 = vpop.permute.xlu1 %1201  ;;  %v898_v47 = vrot.slane %v259_v58, 1  ;;  %v1032_v51 = vrot.slane %v259_v58, 2 }
 0x1e9   : > { %1281 = vst.msk [vmem:[#allocation2 + $0x88] sm:$0xff] %vm1263_vm9, %v1202_v48  ;;  %v1200_v52 = vpop.permute.xlu0 %1199 }
 0x1ea   : > { %1280 = vst.msk [vmem:[#allocation2 + $0x80] sm:$0xff] %vm1263_vm9, %v1200_v52  ;;  %1490 = vrot.lane.b32.xlu1 %v3076_v55, %s2384_s29  ;;  %v901_v31 = vsel %vm345_vm1, %v898_v47, %v900_v29  ;;  %v899_v32 = vsel %vm345_vm1, %v897_v30, %v898_v47  ;;  %v1035_v39 = vsel %vm555_vm2, %v1032_v51, %v1034_v11 }
 0x1eb   : > { %1488 = vrot.lane.b32.xlu0 %v3079_v45, %s2384_s29  ;;  %v1033_v16 = vsel %vm555_vm2, %v1031_v12, %v1032_v51 }
 0x1ec   : > { %v1206_v14 = vpop.permute.xlu1 %1205 }
 0x1ed   : > { %1283 = vst.msk [vmem:[#allocation2 + $0x98] sm:$0xff] %vm1263_vm9, %v1206_v14  ;;  %v1204_v50 = vpop.permute.xlu0 %1203 }
 0x1ee   : > { %1282 = vst.msk [vmem:[#allocation2 + $0x90] sm:$0xff] %vm1263_vm9, %v1204_v50  ;;  %825 = vrot.lane.b32.xlu1 %v2688_v62, %s2379_s8 }
 0x1ef   : > { %823 = vrot.lane.b32.xlu0 %v2691_v63, %s2379_s8 }
 0x1f0   : > { %v1337_v54 = vpop.permute.xlu1 %1336 }
 0x1f1   : > { %1416 = vst.msk [vmem:[#allocation2 + $0x88] sm:$0xff] %vm1398_vm10, %v1337_v54  ;;  %v1335_v25 = vpop.permute.xlu0 %1334 }
 0x1f2   : > { %1415 = vst.msk [vmem:[#allocation2 + $0x80] sm:$0xff] %vm1398_vm10, %v1335_v25  ;;  %829 = vrot.lane.b32.xlu1 %v259_v58, %s2379_s8 }
 0x1f3   : > { %827 = vrot.lane.b32.xlu0 %v258_v2, %s2379_s8 }
 0x1f4   : > { %v1341_v62 = vpop.permute.xlu1 %1340 }
 0x1f5   : > { %1418 = vst.msk [vmem:[#allocation2 + $0x98] sm:$0xff] %vm1398_vm10, %v1341_v62  ;;  %v1339_v63 = vpop.permute.xlu0 %1338 }
 0x1f6   : > { %1417 = vst.msk [vmem:[#allocation2 + $0x90] sm:$0xff] %vm1398_vm10, %v1339_v63  ;;  %960 = vrot.lane.b32.xlu1 %v4084_v15, %s2380_s9  ;;  %v3684_v15 = vld [vmem:[%s3949_s2] ss:$0 sm:$0xff] }
 0x1f7   : > { %958 = vrot.lane.b32.xlu0 %v4085_v56, %s2380_s9 }
 0x1f8   : > { %v1471_v42 = vpop.permute.xlu1 %1470 }
 0x1f9   : > { %1550 = vst.msk [vmem:[#allocation2 + $0x88] sm:$0xff] %vm1532_vm11, %v1471_v42  ;;  %v1469_v0 = vpop.permute.xlu0 %1468 }
 0x1fa   : > { %1549 = vst.msk [vmem:[#allocation2 + $0x80] sm:$0xff] %vm1532_vm11, %v1469_v0  ;;  %964 = vrot.lane.b32.xlu1 %v901_v31, %s2380_s9 }
 0x1fb   : > { %962 = vrot.lane.b32.xlu0 %v899_v32, %s2380_s9  ;;  %s3689_s9 = scalar_lea.vmem %s3950_s3, %s2198_s30 }
 0x1fc   : > { %v1475_v5 = vpop.permute.xlu1 %1474 }
 0x1fd   : > { %1552 = vst.msk [vmem:[#allocation2 + $0x98] sm:$0xff] %vm1532_vm11, %v1475_v5  ;;  %v1473_v27 = vpop.permute.xlu0 %1472 }
 0x1fe   : > { %1551 = vst.msk [vmem:[#allocation2 + $0x90] sm:$0xff] %vm1532_vm11, %v1473_v27  ;;  %1094 = vrot.lane.b32.xlu1 %v3076_v55, %s2381_s10 }
 0x1ff   : > { %1092 = vrot.lane.b32.xlu0 %v3079_v45, %s2381_s10 }
 0x200   : > { %v810_v1 = vpop.permute.xlu1 %809  ;;  %v1582_v7 = vld [vmem:[#allocation2 + $0x88] sm:$0xff] }
 0x201   : > { %885 = vst.msk [vmem:[#allocation2 + $0xa8] sm:$0xff] %vm863_vm6, %v810_v1  ;;  %v808_v9 = vpop.permute.xlu0 %807  ;;  %v1581_v19 = vld [vmem:[#allocation2 + $0x80] sm:$0xff] }
 0x202   : > { %884 = vst.msk [vmem:[#allocation2 + $0xa0] sm:$0xff] %vm863_vm6, %v808_v9  ;;  %1098 = vrot.lane.b32.xlu1 %v1035_v39, %s2381_s10  ;;  %v1605_v55 = vpack.c.bf16 %v1582_v7, %v1581_v19 }
 0x203   : > { %1096 = vrot.lane.b32.xlu0 %v1033_v16, %s2381_s10  ;;  %s2170_s10 = sshll.u32 %s196_s27, 1 }
 0x204   : > { %2240 = vmatprep.mubr.msk.bf16.mxu1 %vm1640_vm12, %v1605_v55  ;;  %v814_v45 = vpop.permute.xlu1 %813  ;;  %v1584_v23 = vld [vmem:[#allocation2 + $0x98] sm:$0xff]  ;;  %s198_s12 = scalar_lea.vmem [#allocation3], %s2170_s10 }
 0x205   : > { %887 = vst.msk [vmem:[#allocation2 + $0xb8] sm:$0xff] %vm863_vm6, %v814_v45  ;;  %v812_v24 = vpop.permute.xlu0 %811  ;;  %v1583_v53 = vld [vmem:[#allocation2 + $0x90] sm:$0xff]  ;;  %s2082_s13 = sshll.u32 %s198_s12, 4  ;;  %s2083_s13 = int_to_ptr.vmem [resolvable:$true] %s2082_s13 }
 0x206   : > { %886 = vst.msk [vmem:[#allocation2 + $0xb0] sm:$0xff] %vm863_vm6, %v812_v24  ;;  %1225 = vrot.lane.b32.xlu1 %v259_v58, %s2382_s11  ;;  %v1606_v17 = vpack.c.bf16 %v1584_v23, %v1583_v53  ;;  %s2315_s28 = scalar_lea.vmem %s2083_s13, 32 }
 0x207   : > { %1223 = vrot.lane.b32.xlu0 %v258_v2, %s2382_s11  ;;  %p2316_p11 = scmp.ne.s32.totalorder %s2083_s13, %s2315_s28 }
 0x208   : > { %2241 = vmatmul.mubr.msk.bf16.vlgmr.msra.gmra.mxu1 %vm1640_vm12, %v1606_v17  ;;  %v945_v28 = vpop.permute.xlu1 %944 }
 0x209   : > { %1020 = vst.msk [vmem:[#allocation2 + $0xa8] sm:$0xff] %vm998_vm7, %v945_v28  ;;  %v943_v33 = vpop.permute.xlu0 %942  ;;  %p2317_p12 = pnand %p2316_p11, %p2449_p5 }
 0x20a   : > { %1019 = vst.msk [vmem:[#allocation2 + $0xa0] sm:$0xff] %vm998_vm7, %v943_v33  ;;  %1229 = vrot.lane.b32.xlu1 %v262_v44, %s2382_s11 }
 0x20b   : > { %1227 = vrot.lane.b32.xlu0 %v261_v18, %s2382_s11  ;;  %s2195_s11 = sshll.u32 %s2432_s19, 5  ;;  %p2318_p13 = pneg %p2317_p12 }
 0x20c   : > { %v949_v38 = vpop.permute.xlu1 %948  ;;  %s2080_s22 = scalar_lea.hbm %s3951_s4, %s2195_s11 }
 0x20d   : > { %1022 = vst.msk [vmem:[#allocation2 + $0xb8] sm:$0xff] %vm998_vm7, %v949_v38  ;;  %v947_v43 = vpop.permute.xlu0 %946 }
 0x20e   : > { %1021 = vst.msk [vmem:[#allocation2 + $0xb0] sm:$0xff] %vm998_vm7, %v947_v43  ;;  %1360 = vrot.lane.b32.xlu1 %v901_v31, %s2383_s14 }
 0x20f   : > { %1358 = vrot.lane.b32.xlu0 %v899_v32, %s2383_s14 }
 0x210   : > { %v1079_v40 = vpop.permute.xlu1 %1078 }
 0x211   : > { %1154 = vst.msk [vmem:[#allocation2 + $0xa8] sm:$0xff] %vm1132_vm8, %v1079_v40  ;;  %v1077_v36 = vpop.permute.xlu0 %1076 }
 0x212   : > { %1153 = vst.msk [vmem:[#allocation2 + $0xa0] sm:$0xff] %vm1132_vm8, %v1077_v36  ;;  %1364 = vrot.lane.b32.xlu1 %v1301_v37, %s2383_s14 }
 0x213   : > { %1362 = vrot.lane.b32.xlu0 %v1299_v60, %s2383_s14 }
 0x214   : > { %v1083_v26 = vpop.permute.xlu1 %1082 }
 0x215   : > { %1156 = vst.msk [vmem:[#allocation2 + $0xb8] sm:$0xff] %vm1132_vm8, %v1083_v26  ;;  %v1081_v35 = vpop.permute.xlu0 %1080 }
 0x216   : > { %1155 = vst.msk [vmem:[#allocation2 + $0xb0] sm:$0xff] %vm1132_vm8, %v1081_v35  ;;  %1494 = vrot.lane.b32.xlu1 %v1035_v39, %s2384_s29 }
 0x217   : > { %1492 = vrot.lane.b32.xlu0 %v1033_v16, %s2384_s29 }
 0x218   : > { %v1210_v13 = vpop.permute.xlu1 %1209 }
 0x219   : > { %1285 = vst.msk [vmem:[#allocation2 + $0xa8] sm:$0xff] %vm1263_vm9, %v1210_v13  ;;  %v1208_v57 = vpop.permute.xlu0 %1207 }
 0x21a   : > { %1284 = vst.msk [vmem:[#allocation2 + $0xa0] sm:$0xff] %vm1263_vm9, %v1208_v57  ;;  %1498 = vrot.lane.b32.xlu1 %v1435_v8, %s2384_s29 }
 0x21b   : > { %1496 = vrot.lane.b32.xlu0 %v1433_v20, %s2384_s29  ;;  %s2385_s29 = smov [#allocation3]  }
 0x21c   : > { %v1214_v49 = vpop.permute.xlu1 %1213  ;;  %s2319_s19 = sshll.u32 %s2385_s29, 4  ;;  %s2320_s19 = int_to_ptr.vmem [resolvable:$false] %s2319_s19 }
 0x21d   : > { %1287 = vst.msk [vmem:[#allocation2 + $0xb8] sm:$0xff] %vm1263_vm9, %v1214_v49  ;;  %v1212_v46 = vpop.permute.xlu0 %1211  ;;  %s2321_s30 = scalar_lea.vmem %s2320_s19, 64  ;;  %p2322_p0 = scmp.lt.s32.totalorder %s2083_s13, %s2320_s19 }
 0x21e   : > { %1286 = vst.msk [vmem:[#allocation2 + $0xb0] sm:$0xff] %vm1263_vm9, %v1212_v46  ;;  %p2323_p1 = scmp.lt.s32.totalorder %s2321_s30, %s2315_s28 }
 0x220   : > { %v2226_v56 = vpop.f32.mrf.mxu0  ;;  %v1345_v59 = vpop.permute.xlu1 %1344  ;;  %p2324_p2 = por %p2323_p1, %p2322_p0 }
 0x221   : > { %v1736_v10 = vadd.f32 %v2226_v56, %v3684_v15  ;;  %1420 = vst.msk [vmem:[#allocation2 + $0xa8] sm:$0xff] %vm1398_vm10, %v1345_v59  ;;  %v1343_v48 = vpop.permute.xlu0 %1342 }
 0x222   : > { %1419 = vst.msk [vmem:[#allocation2 + $0xa0] sm:$0xff] %vm1398_vm10, %v1343_v48  ;;  %v1727_v52 = vpop.f32.mrf.mxu0  ;;  %p2325_p3 = pnand %p2324_p2, %p2318_p13 }
 0x223   : > { %2030 = vst.msk [vmem:[%s3689_s9 + $0x10] sm:$0xff] %vm1854_vm13, %v1736_v10  ;;  %v1728_v14 = vadd.f32 %v3684_v15, %v1727_v52  ;;  %v1928_v30 = vmul.f32 %v1736_v10, %v1736_v10  ;;  %v1858_v0 = vsel %vm1854_vm13, %v1736_v10, 0.0 }
 0x224   : > { %v2227_v50 = vpop.f32.mrf.mxu0  ;;  %v1349_v58 = vpop.permute.xlu1 %1348 }
 0x225   : > { %2028 = vst.msk [vmem:[%s3689_s9] sm:$0xff] %vm1854_vm13, %v1728_v14  ;;  %v1739_v54 = vadd.f32 %v2227_v50, %v3684_v15  ;;  %v1347_v2 = vpop.permute.xlu0 %1346  ;;  %v1926_v25 = vmul.f32 %v1728_v14, %v1728_v14  ;;  %v1855_v62 = vsel %vm1854_vm13, %v1728_v14, 0.0  ;;  %v1961_v1 = vsel %vm1854_vm13, %v1928_v30, 0.0 }
 0x226   : > { %1422 = vst.msk [vmem:[#allocation2 + $0xb8] sm:$0xff] %vm1398_vm10, %v1349_v58  ;;  %1421 = vst.msk [vmem:[#allocation2 + $0xb0] sm:$0xff] %vm1398_vm10, %v1347_v2  ;;  %v1730_v4 = vpop.f32.mrf.mxu0 }
 0x227   : > { %2031 = vst.msk [vmem:[%s3689_s9 + $0x18] sm:$0xff] %vm1854_vm13, %v1739_v54  ;;  %v1731_v47 = vadd.f32 %v3684_v15, %v1730_v4  ;;  %v1958_v51 = vsel %vm1854_vm13, %v1926_v25, 0.0  ;;  %v1929_v11 = vmul.f32 %v1739_v54, %v1739_v54  ;;  %v1860_v16 = vsel %vm1854_vm13, %v1739_v54, 0.0 }
 0x228   : > { %v1479_v29 = vpop.permute.xlu1 %1478 }
 0x229   : > { %v1856_v63 = vsel %vm1854_vm13, %v1731_v47, 0.0  ;;  %v1927_v31 = vmul.f32 %v1731_v47, %v1731_v47  ;;  %2029 = vst.msk [vmem:[%s3689_s9 + $0x8] sm:$0xff] %vm1854_vm13, %v1731_v47  ;;  %v1477_v42 = vpop.permute.xlu0 %1476  ;;  %v1963_v55 = vsel %vm1854_vm13, %v1929_v11, 0.0 }
 0x22a   : > { %1554 = vst.msk [vmem:[#allocation2 + $0xa8] sm:$0xff] %vm1532_vm11, %v1479_v29  ;;  %v1857_v32 = vadd.f32 %v1856_v63, %v1855_v62  ;;  %1553 = vst.msk [vmem:[#allocation2 + $0xa0] sm:$0xff] %vm1532_vm11, %v1477_v42 }
 0x22b   : > { %v1959_v12 = vsel %vm1854_vm13, %v1927_v31, 0.0 }
 0x22c   : > { %v1859_v5 = vadd.f32 %v1858_v0, %v1857_v32  ;;  %v1960_v27 = vadd.f32 %v1959_v12, %v1958_v51  ;;  %v1483_v39 = vpop.permute.xlu1 %1482 }
 0x22d   : > { %1556 = vst.msk [vmem:[#allocation2 + $0xb8] sm:$0xff] %vm1532_vm11, %v1483_v39  ;;  %v1481_v7 = vpop.permute.xlu0 %1480 }
 0x22e   : > { %v1962_v9 = vadd.f32 %v1961_v1, %v1960_v27  ;;  %1555 = vst.msk [vmem:[#allocation2 + $0xb0] sm:$0xff] %vm1532_vm11, %v1481_v7  ;;  %v1861_v19 = vadd.f32 %v1860_v16, %v1859_v5 }
 0x230   : > { %v818_v45 = vpop.permute.xlu1 %817  ;;  %v1964_v24 = vadd.f32 %v1963_v55, %v1962_v9 }
 0x231   : > { %v1586_v23 = vld [vmem:[#allocation2 + $0xa8] sm:$0xff]  ;;  %889 = vst.msk [vmem:[#allocation2 + $0xc8] sm:$0xff] %vm863_vm6, %v818_v45  ;;  %v816_v53 = vpop.permute.xlu0 %815  ;;  %v1585_v17 = vld [vmem:[#allocation2 + $0xa0] sm:$0xff] }
 0x232   : > { %888 = vst.msk [vmem:[#allocation2 + $0xc0] sm:$0xff] %vm863_vm6, %v816_v53  ;;  %v1607_v44 = vpack.c.bf16 %v1586_v23, %v1585_v17 }
 0x234   : > { %2244 = vmatprep.mubr.msk.bf16.mxu1 %vm1640_vm12, %v1607_v44  ;;  %v822_v28 = vpop.permute.xlu1 %821  ;;  %v1588_v18 = vld [vmem:[#allocation2 + $0xb8] sm:$0xff] }
 0x235   : > { %891 = vst.msk [vmem:[#allocation2 + $0xd8] sm:$0xff] %vm863_vm6, %v822_v28  ;;  %v820_v34 = vpop.permute.xlu0 %819  ;;  %v1587_v33 = vld [vmem:[#allocation2 + $0xb0] sm:$0xff] }
 0x236   : > { %890 = vst.msk [vmem:[#allocation2 + $0xd0] sm:$0xff] %vm863_vm6, %v820_v34  ;;  %v1608_v61 = vpack.c.bf16 %v1588_v18, %v1587_v33 }
 0x238   : > { %2245 = vmatmul.mubr.msk.bf16.gmra.mxu1 %vm1640_vm12, %v1608_v61  ;;  %v953_v22 = vpop.permute.xlu1 %952 }
 0x239   : > { %1024 = vst.msk [vmem:[#allocation2 + $0xc8] sm:$0xff] %vm998_vm7, %v953_v22  ;;  %v951_v6 = vpop.permute.xlu0 %950 }
 0x23a   : > { %1023 = vst.msk [vmem:[#allocation2 + $0xc0] sm:$0xff] %vm998_vm7, %v951_v6 }
 0x23c   : > { %v957_v38 = vpop.permute.xlu1 %956 }
 0x23d   : > { %1026 = vst.msk [vmem:[#allocation2 + $0xd8] sm:$0xff] %vm998_vm7, %v957_v38  ;;  %v955_v43 = vpop.permute.xlu0 %954 }
 0x23e   : > { %1025 = vst.msk [vmem:[#allocation2 + $0xd0] sm:$0xff] %vm998_vm7, %v955_v43 }
 0x240   : > { %v1087_v37 = vpop.permute.xlu1 %1086 }
 0x241   : > { %1158 = vst.msk [vmem:[#allocation2 + $0xc8] sm:$0xff] %vm1132_vm8, %v1087_v37  ;;  %v1085_v40 = vpop.permute.xlu0 %1084 }
 0x242   : > { %1157 = vst.msk [vmem:[#allocation2 + $0xc0] sm:$0xff] %vm1132_vm8, %v1085_v40 }
 0x244   : > { %v1091_v60 = vpop.permute.xlu1 %1090 }
 0x245   : > { %1160 = vst.msk [vmem:[#allocation2 + $0xd8] sm:$0xff] %vm1132_vm8, %v1091_v60  ;;  %v1089_v36 = vpop.permute.xlu0 %1088 }
 0x246   : > { %1159 = vst.msk [vmem:[#allocation2 + $0xd0] sm:$0xff] %vm1132_vm8, %v1089_v36 }
 0x248   : > { %v2230_v21 = vpop.f32.mrf.mxu0  ;;  %v1218_v3 = vpop.permute.xlu1 %1217 }
 0x249   : > { %v1752_v41 = vadd.f32 %v2230_v21, %v3684_v15  ;;  %1289 = vst.msk [vmem:[#allocation2 + $0xc8] sm:$0xff] %vm1263_vm9, %v1218_v3  ;;  %v1216_v26 = vpop.permute.xlu0 %1215 }
 0x24a   : > { %1288 = vst.msk [vmem:[#allocation2 + $0xc0] sm:$0xff] %vm1263_vm9, %v1216_v26  ;;  %v1743_v35 = vpop.f32.mrf.mxu0 }
 0x24b   : > { %2034 = vst.msk [vmem:[%s3689_s9 + $0x30] sm:$0xff] %vm1854_vm13, %v1752_v41  ;;  %v1744_v8 = vadd.f32 %v3684_v15, %v1743_v35  ;;  %v1932_v58 = vmul.f32 %v1752_v41, %v1752_v41  ;;  %v1866_v47 = vsel %vm1854_vm13, %v1752_v41, 0.0 }
 0x24c   : > { %v2231_v13 = vpop.f32.mrf.mxu0  ;;  %v1222_v20 = vpop.permute.xlu1 %1221 }
 0x24d   : > { %v1862_v57 = vsel %vm1854_vm13, %v1744_v8, 0.0  ;;  %v1930_v49 = vmul.f32 %v1744_v8, %v1744_v8  ;;  %2032 = vst.msk [vmem:[%s3689_s9 + $0x20] sm:$0xff] %vm1854_vm13, %v1744_v8  ;;  %v1755_v46 = vadd.f32 %v2231_v13, %v3684_v15  ;;  %v1220_v56 = vpop.permute.xlu0 %1219  ;;  %v1969_v42 = vsel %vm1854_vm13, %v1932_v58, 0.0 }
 0x24e   : > { %1291 = vst.msk [vmem:[#allocation2 + $0xd8] sm:$0xff] %vm1263_vm9, %v1222_v20  ;;  %v1863_v59 = vadd.f32 %v1862_v57, %v1861_v19  ;;  %1290 = vst.msk [vmem:[#allocation2 + $0xd0] sm:$0xff] %vm1263_vm9, %v1220_v56  ;;  %v1746_v10 = vpop.f32.mrf.mxu0 }
 0x24f   : > { %v1965_v48 = vsel %vm1854_vm13, %v1930_v49, 0.0  ;;  %2035 = vst.msk [vmem:[%s3689_s9 + $0x38] sm:$0xff] %vm1854_vm13, %v1755_v46  ;;  %v1747_v52 = vadd.f32 %v3684_v15, %v1746_v10  ;;  %v1933_v29 = vmul.f32 %v1755_v46, %v1755_v46  ;;  %v1868_v32 = vsel %vm1854_vm13, %v1755_v46, 0.0 }
 0x250   : > { %v1966_v14 = vadd.f32 %v1965_v48, %v1964_v24  ;;  %v1353_v50 = vpop.permute.xlu1 %1352 }
 0x251   : > { %v1864_v54 = vsel %vm1854_vm13, %v1747_v52, 0.0  ;;  %v1931_v2 = vmul.f32 %v1747_v52, %v1747_v52  ;;  %2033 = vst.msk [vmem:[%s3689_s9 + $0x28] sm:$0xff] %vm1854_vm13, %v1747_v52  ;;  %v1351_v4 = vpop.permute.xlu0 %1350  ;;  %v1971_v12 = vsel %vm1854_vm13, %v1933_v29, 0.0 }
 0x252   : > { %1424 = vst.msk [vmem:[#allocation2 + $0xc8] sm:$0xff] %vm1398_vm10, %v1353_v50  ;;  %v1865_v25 = vadd.f32 %v1864_v54, %v1863_v59  ;;  %1423 = vst.msk [vmem:[#allocation2 + $0xc0] sm:$0xff] %vm1398_vm10, %v1351_v4 }
 0x253   : > { %v1967_v30 = vsel %vm1854_vm13, %v1931_v2, 0.0 }
 0x254   : > { %v1867_v62 = vadd.f32 %v1866_v47, %v1865_v25  ;;  %v1968_v63 = vadd.f32 %v1967_v30, %v1966_v14  ;;  %v1357_v31 = vpop.permute.xlu1 %1356 }
 0x255   : > { %1426 = vst.msk [vmem:[#allocation2 + $0xd8] sm:$0xff] %vm1398_vm10, %v1357_v31  ;;  %v1355_v0 = vpop.permute.xlu0 %1354 }
 0x256   : > { %v1970_v51 = vadd.f32 %v1969_v42, %v1968_v63  ;;  %1425 = vst.msk [vmem:[#allocation2 + $0xd0] sm:$0xff] %vm1398_vm10, %v1355_v0  ;;  %v1869_v11 = vadd.f32 %v1868_v32, %v1867_v62 }
 0x258   : > { %v1487_v5 = vpop.permute.xlu1 %1486  ;;  %v1972_v27 = vadd.f32 %v1971_v12, %v1970_v51 }
 0x259   : > { %1558 = vst.msk [vmem:[#allocation2 + $0xc8] sm:$0xff] %vm1532_vm11, %v1487_v5  ;;  %v1485_v39 = vpop.permute.xlu0 %1484 }
 0x25a   : > { %1557 = vst.msk [vmem:[#allocation2 + $0xc0] sm:$0xff] %vm1532_vm11, %v1485_v39 }
 0x25c   : > { %v1491_v1 = vpop.permute.xlu1 %1490 }
 0x25d   : > { %1560 = vst.msk [vmem:[#allocation2 + $0xd8] sm:$0xff] %vm1532_vm11, %v1491_v1  ;;  %v1489_v16 = vpop.permute.xlu0 %1488 }
 0x25e   : > { %1559 = vst.msk [vmem:[#allocation2 + $0xd0] sm:$0xff] %vm1532_vm11, %v1489_v16 }
 0x260   : > { %v826_v7 = vpop.permute.xlu1 %825  ;;  %v1590_v9 = vld [vmem:[#allocation2 + $0xc8] sm:$0xff] }
 0x261   : > { %893 = vst.msk [vmem:[#allocation2 + $0xe8] sm:$0xff] %vm863_vm6, %v826_v7  ;;  %v824_v19 = vpop.permute.xlu0 %823  ;;  %v1589_v55 = vld [vmem:[#allocation2 + $0xc0] sm:$0xff] }
 0x262   : > { %892 = vst.msk [vmem:[#allocation2 + $0xe0] sm:$0xff] %vm863_vm6, %v824_v19  ;;  %v1609_v45 = vpack.c.bf16 %v1590_v9, %v1589_v55 }
 0x264   : > { %2248 = vmatprep.mubr.msk.bf16.mxu1 %vm1640_vm12, %v1609_v45  ;;  %v830_v23 = vpop.permute.xlu1 %829  ;;  %v1592_v24 = vld [vmem:[#allocation2 + $0xd8] sm:$0xff] }
 0x265   : > { %895 = vst.msk [vmem:[#allocation2 + $0xf8] sm:$0xff] %vm863_vm6, %v830_v23  ;;  %v828_v53 = vpop.permute.xlu0 %827  ;;  %v1591_v17 = vld [vmem:[#allocation2 + $0xd0] sm:$0xff] }
 0x266   : > { %894 = vst.msk [vmem:[#allocation2 + $0xf0] sm:$0xff] %vm863_vm6, %v828_v53  ;;  %v1610_v44 = vpack.c.bf16 %v1592_v24, %v1591_v17 }
 0x268   : > { %2249 = vmatmul.mubr.msk.bf16.gmra.mxu1 %vm1640_vm12, %v1610_v44  ;;  %v961_v28 = vpop.permute.xlu1 %960 }
 0x269   : > { %1028 = vst.msk [vmem:[#allocation2 + $0xe8] sm:$0xff] %vm998_vm7, %v961_v28  ;;  %v959_v18 = vpop.permute.xlu0 %958 }
 0x26a   : > { %1027 = vst.msk [vmem:[#allocation2 + $0xe0] sm:$0xff] %vm998_vm7, %v959_v18 }
 0x26c   : > { %v965_v34 = vpop.permute.xlu1 %964 }
 0x26d   : > { %1030 = vst.msk [vmem:[#allocation2 + $0xf8] sm:$0xff] %vm998_vm7, %v965_v34  ;;  %v963_v33 = vpop.permute.xlu0 %962 }
 0x26e   : > { %1029 = vst.msk [vmem:[#allocation2 + $0xf0] sm:$0xff] %vm998_vm7, %v963_v33 }
 0x270   : > { %v2234_v61 = vpop.f32.mrf.mxu0  ;;  %v1095_v22 = vpop.permute.xlu1 %1094 }
 0x271   : > { %v1768_v6 = vadd.f32 %v2234_v61, %v3684_v15  ;;  %1162 = vst.msk [vmem:[#allocation2 + $0xe8] sm:$0xff] %vm1132_vm8, %v1095_v22  ;;  %v1093_v38 = vpop.permute.xlu0 %1092 }
 0x272   : > { %1161 = vst.msk [vmem:[#allocation2 + $0xe0] sm:$0xff] %vm1132_vm8, %v1093_v38  ;;  %v1759_v43 = vpop.f32.mrf.mxu0 }
 0x273   : > { %2038 = vst.msk [vmem:[%s3689_s9 + $0x50] sm:$0xff] %vm1854_vm13, %v1768_v6  ;;  %v1760_v37 = vadd.f32 %v3684_v15, %v1759_v43  ;;  %v1936_v49 = vmul.f32 %v1768_v6, %v1768_v6  ;;  %v1874_v48 = vsel %vm1854_vm13, %v1768_v6, 0.0 }
 0x274   : > { %v2235_v40 = vpop.f32.mrf.mxu0  ;;  %v1099_v60 = vpop.permute.xlu1 %1098 }
 0x275   : > { %v1870_v36 = vsel %vm1854_vm13, %v1760_v37, 0.0  ;;  %v1934_v21 = vmul.f32 %v1760_v37, %v1760_v37  ;;  %2036 = vst.msk [vmem:[%s3689_s9 + $0x40] sm:$0xff] %vm1854_vm13, %v1760_v37  ;;  %v1771_v3 = vadd.f32 %v2235_v40, %v3684_v15  ;;  %v1097_v41 = vpop.permute.xlu0 %1096  ;;  %v1977_v2 = vsel %vm1854_vm13, %v1936_v49, 0.0 }
 0x276   : > { %1164 = vst.msk [vmem:[#allocation2 + $0xf8] sm:$0xff] %vm1132_vm8, %v1099_v60  ;;  %v1871_v26 = vadd.f32 %v1870_v36, %v1869_v11  ;;  %1163 = vst.msk [vmem:[#allocation2 + $0xf0] sm:$0xff] %vm1132_vm8, %v1097_v41  ;;  %v1762_v35 = vpop.f32.mrf.mxu0 }
 0x277   : > { %v1973_v8 = vsel %vm1854_vm13, %v1934_v21, 0.0  ;;  %2039 = vst.msk [vmem:[%s3689_s9 + $0x58] sm:$0xff] %vm1854_vm13, %v1771_v3  ;;  %v1763_v13 = vadd.f32 %v3684_v15, %v1762_v35  ;;  %v1937_v52 = vmul.f32 %v1771_v3, %v1771_v3  ;;  %v1876_v4 = vsel %vm1854_vm13, %v1771_v3, 0.0 }
 0x278   : > { %v1974_v20 = vadd.f32 %v1973_v8, %v1972_v27  ;;  %v1226_v57 = vpop.permute.xlu1 %1225 }
 0x279   : > { %v1872_v46 = vsel %vm1854_vm13, %v1763_v13, 0.0  ;;  %v1935_v56 = vmul.f32 %v1763_v13, %v1763_v13  ;;  %2037 = vst.msk [vmem:[%s3689_s9 + $0x48] sm:$0xff] %vm1854_vm13, %v1763_v13  ;;  %v1224_v59 = vpop.permute.xlu0 %1223  ;;  %v1979_v30 = vsel %vm1854_vm13, %v1937_v52, 0.0 }
 0x27a   : > { %1293 = vst.msk [vmem:[#allocation2 + $0xe8] sm:$0xff] %vm1263_vm9, %v1226_v57  ;;  %v1873_v10 = vadd.f32 %v1872_v46, %v1871_v26  ;;  %1292 = vst.msk [vmem:[#allocation2 + $0xe0] sm:$0xff] %vm1263_vm9, %v1224_v59 }
 0x27b   : > { %v1975_v14 = vsel %vm1854_vm13, %v1935_v56, 0.0 }
 0x27c   : > { %v1875_v50 = vadd.f32 %v1874_v48, %v1873_v10  ;;  %v1976_v58 = vadd.f32 %v1975_v14, %v1974_v20  ;;  %v1230_v54 = vpop.permute.xlu1 %1229 }
 0x27d   : > { %1295 = vst.msk [vmem:[#allocation2 + $0xf8] sm:$0xff] %vm1263_vm9, %v1230_v54  ;;  %v1228_v25 = vpop.permute.xlu0 %1227 }
 0x27e   : > { %v1978_v47 = vadd.f32 %v1977_v2, %v1976_v58  ;;  %1294 = vst.msk [vmem:[#allocation2 + $0xf0] sm:$0xff] %vm1263_vm9, %v1228_v25  ;;  %v1877_v29 = vadd.f32 %v1876_v4, %v1875_v50 }
 0x280   : > { %v1361_v62 = vpop.permute.xlu1 %1360  ;;  %v1980_v63 = vadd.f32 %v1979_v30, %v1978_v47 }
 0x281   : > { %1428 = vst.msk [vmem:[#allocation2 + $0xe8] sm:$0xff] %vm1398_vm10, %v1361_v62  ;;  %v1359_v31 = vpop.permute.xlu0 %1358 }
 0x282   : > { %1427 = vst.msk [vmem:[#allocation2 + $0xe0] sm:$0xff] %vm1398_vm10, %v1359_v31 }
 0x284   : > { %v1365_v42 = vpop.permute.xlu1 %1364 }
 0x285   : > { %1430 = vst.msk [vmem:[#allocation2 + $0xf8] sm:$0xff] %vm1398_vm10, %v1365_v42  ;;  %v1363_v32 = vpop.permute.xlu0 %1362 }
 0x286   : > { %1429 = vst.msk [vmem:[#allocation2 + $0xf0] sm:$0xff] %vm1398_vm10, %v1363_v32 }
 0x288   : > { %v1495_v0 = vpop.permute.xlu1 %1494 }
 0x289   : > { %1562 = vst.msk [vmem:[#allocation2 + $0xe8] sm:$0xff] %vm1532_vm11, %v1495_v0  ;;  %v1493_v51 = vpop.permute.xlu0 %1492 }
 0x28a   : > { %1561 = vst.msk [vmem:[#allocation2 + $0xe0] sm:$0xff] %vm1532_vm11, %v1493_v51 }
 0x28c   : > { %v1499_v11 = vpop.permute.xlu1 %1498 }
 0x28d   : > { %1564 = vst.msk [vmem:[#allocation2 + $0xf8] sm:$0xff] %vm1532_vm11, %v1499_v11  ;;  %v1497_v12 = vpop.permute.xlu0 %1496 }
 0x28e   : > { %1563 = vst.msk [vmem:[#allocation2 + $0xf0] sm:$0xff] %vm1532_vm11, %v1497_v12 }
 0x290   : > { %v1594_v5 = vld [vmem:[#allocation2 + $0xe8] sm:$0xff] }
 0x291   : > { %v1593_v27 = vld [vmem:[#allocation2 + $0xe0] sm:$0xff] }
 0x292   : > { %v1611_v39 = vpack.c.bf16 %v1594_v5, %v1593_v27 }
 0x294   : > { %2252 = vmatprep.mubr.msk.bf16.mxu1 %vm1640_vm12, %v1611_v39  ;;  %v1596_v1 = vld [vmem:[#allocation2 + $0xf8] sm:$0xff] }
 0x295   : > { %v1595_v16 = vld [vmem:[#allocation2 + $0xf0] sm:$0xff] }
 0x296   : > { %v1612_v7 = vpack.c.bf16 %v1596_v1, %v1595_v16 }
 0x298   : > { %v2238_v9 = vpop.f32.mrf.mxu0  ;;  %2253 = vmatmul.mubr.msk.bf16.gmra.mxu1 %vm1640_vm12, %v1612_v7 }
 0x299   : > { %v1784_v19 = vadd.f32 %v2238_v9, %v3684_v15 }
 0x29a   : > { %v1775_v55 = vpop.f32.mrf.mxu0 }
 0x29b   : > { %2042 = vst.msk [vmem:[%s3689_s9 + $0x70] sm:$0xff] %vm1854_vm13, %v1784_v19  ;;  %v1776_v45 = vadd.f32 %v3684_v15, %v1775_v55  ;;  %v1940_v61 = vmul.f32 %v1784_v19, %v1784_v19  ;;  %v1882_v43 = vsel %vm1854_vm13, %v1784_v19, 0.0 }
 0x29c   : > { %v2239_v23 = vpop.f32.mrf.mxu0 }
 0x29d   : > { %v1878_v24 = vsel %vm1854_vm13, %v1776_v45, 0.0  ;;  %v1938_v53 = vmul.f32 %v1776_v45, %v1776_v45  ;;  %2040 = vst.msk [vmem:[%s3689_s9 + $0x60] sm:$0xff] %vm1854_vm13, %v1776_v45  ;;  %v1787_v17 = vadd.f32 %v2239_v23, %v3684_v15  ;;  %v1985_v21 = vsel %vm1854_vm13, %v1940_v61, 0.0 }
 0x29e   : > { %v1879_v44 = vadd.f32 %v1878_v24, %v1877_v29  ;;  %v1778_v28 = vpop.f32.mrf.mxu0 }
 0x29f   : > { %v1981_v18 = vsel %vm1854_vm13, %v1938_v53, 0.0  ;;  %2043 = vst.msk [vmem:[%s3689_s9 + $0x78] sm:$0xff] %vm1854_vm13, %v1787_v17  ;;  %v1779_v34 = vadd.f32 %v3684_v15, %v1778_v28  ;;  %v1941_v37 = vmul.f32 %v1787_v17, %v1787_v17  ;;  %v1884_v3 = vsel %vm1854_vm13, %v1787_v17, 0.0 }
 0x2a0   : > { %v1982_v33 = vadd.f32 %v1981_v18, %v1980_v63 }
 0x2a1   : > { %v1880_v22 = vsel %vm1854_vm13, %v1779_v34, 0.0  ;;  %v1939_v6 = vmul.f32 %v1779_v34, %v1779_v34  ;;  %2041 = vst.msk [vmem:[%s3689_s9 + $0x68] sm:$0xff] %vm1854_vm13, %v1779_v34  ;;  %v1987_v35 = vsel %vm1854_vm13, %v1941_v37, 0.0 }
 0x2a2   : > { %v1881_v38 = vadd.f32 %v1880_v22, %v1879_v44 }
 0x2a3   : > { %v1983_v40 = vsel %vm1854_vm13, %v1939_v6, 0.0 }
 0x2a4   : > { %v1883_v60 = vadd.f32 %v1882_v43, %v1881_v38  ;;  %v1984_v36 = vadd.f32 %v1983_v40, %v1982_v33 }
 0x2a6   : > { %v1986_v41 = vadd.f32 %v1985_v21, %v1984_v36  ;;  %v1885_v26 = vadd.f32 %v1884_v3, %v1883_v60 }
 0x2a8   : > { %v1988_v8 = vadd.f32 %v1987_v35, %v1986_v41 }
 0x2c8   : > { %v2242_v13 = vpop.f32.mrf.mxu1 }
 0x2c9   : > { %v1800_v20 = vadd.f32 %v2242_v13, %v3684_v15 }
 0x2ca   : > { %v1791_v57 = vpop.f32.mrf.mxu1 }
 0x2cb   : > { %2046 = vst.msk [vmem:[%s3689_s9 + $0x90] sm:$0xff] %vm1854_vm13, %v1800_v20  ;;  %v1792_v49 = vadd.f32 %v3684_v15, %v1791_v57  ;;  %v1944_v54 = vmul.f32 %v1800_v20, %v1800_v20  ;;  %v1890_v47 = vsel %vm1854_vm13, %v1800_v20, 0.0 }
 0x2cc   : > { %v2243_v46 = vpop.f32.mrf.mxu1 }
 0x2cd   : > { %v1886_v56 = vsel %vm1854_vm13, %v1792_v49, 0.0  ;;  %v1942_v59 = vmul.f32 %v1792_v49, %v1792_v49  ;;  %2044 = vst.msk [vmem:[%s3689_s9 + $0x80] sm:$0xff] %vm1854_vm13, %v1792_v49  ;;  %v1803_v10 = vadd.f32 %v2243_v46, %v3684_v15  ;;  %v1993_v31 = vsel %vm1854_vm13, %v1944_v54, 0.0 }
 0x2ce   : > { %v1887_v48 = vadd.f32 %v1886_v56, %v1885_v26  ;;  %v1794_v52 = vpop.f32.mrf.mxu1 }
 0x2cf   : > { %v1989_v14 = vsel %vm1854_vm13, %v1942_v59, 0.0  ;;  %2047 = vst.msk [vmem:[%s3689_s9 + $0x98] sm:$0xff] %vm1854_vm13, %v1803_v10  ;;  %v1795_v50 = vadd.f32 %v3684_v15, %v1794_v52  ;;  %v1945_v29 = vmul.f32 %v1803_v10, %v1803_v10  ;;  %v1892_v42 = vsel %vm1854_vm13, %v1803_v10, 0.0 }
 0x2d0   : > { %v1990_v58 = vadd.f32 %v1989_v14, %v1988_v8 }
 0x2d1   : > { %v1888_v2 = vsel %vm1854_vm13, %v1795_v50, 0.0  ;;  %v1943_v4 = vmul.f32 %v1795_v50, %v1795_v50  ;;  %2045 = vst.msk [vmem:[%s3689_s9 + $0x88] sm:$0xff] %vm1854_vm13, %v1795_v50  ;;  %v1995_v51 = vsel %vm1854_vm13, %v1945_v29, 0.0 }
 0x2d2   : > { %v1889_v25 = vadd.f32 %v1888_v2, %v1887_v48 }
 0x2d3   : > { %v1991_v30 = vsel %vm1854_vm13, %v1943_v4, 0.0 }
 0x2d4   : > { %v1891_v62 = vadd.f32 %v1890_v47, %v1889_v25  ;;  %v1992_v63 = vadd.f32 %v1991_v30, %v1990_v58 }
 0x2d6   : > { %v1994_v32 = vadd.f32 %v1993_v31, %v1992_v63  ;;  %v1893_v0 = vadd.f32 %v1892_v42, %v1891_v62 }
 0x2d8   : > { %v1996_v11 = vadd.f32 %v1995_v51, %v1994_v32 }
 0x2f8   : > { %v2246_v12 = vpop.f32.mrf.mxu1 }
 0x2f9   : > { %v1816_v5 = vadd.f32 %v2246_v12, %v3684_v15 }
 0x2fa   : > { %v1807_v27 = vpop.f32.mrf.mxu1 }
 0x2fb   : > { %2050 = vst.msk [vmem:[%s3689_s9 + $0xb0] sm:$0xff] %vm1854_vm13, %v1816_v5  ;;  %v1808_v39 = vadd.f32 %v3684_v15, %v1807_v27  ;;  %v1948_v53 = vmul.f32 %v1816_v5, %v1816_v5  ;;  %v1898_v18 = vsel %vm1854_vm13, %v1816_v5, 0.0 }
 0x2fc   : > { %v2247_v1 = vpop.f32.mrf.mxu1 }
 0x2fd   : > { %v1894_v16 = vsel %vm1854_vm13, %v1808_v39, 0.0  ;;  %v1946_v7 = vmul.f32 %v1808_v39, %v1808_v39  ;;  %2048 = vst.msk [vmem:[%s3689_s9 + $0xa0] sm:$0xff] %vm1854_vm13, %v1808_v39  ;;  %v1819_v9 = vadd.f32 %v2247_v1, %v3684_v15  ;;  %v2001_v6 = vsel %vm1854_vm13, %v1948_v53, 0.0 }
 0x2fe   : > { %v1895_v19 = vadd.f32 %v1894_v16, %v1893_v0  ;;  %v1810_v55 = vpop.f32.mrf.mxu1 }
 0x2ff   : > { %v1997_v45 = vsel %vm1854_vm13, %v1946_v7, 0.0  ;;  %2051 = vst.msk [vmem:[%s3689_s9 + $0xb8] sm:$0xff] %vm1854_vm13, %v1819_v9  ;;  %v1811_v23 = vadd.f32 %v3684_v15, %v1810_v55  ;;  %v1949_v34 = vmul.f32 %v1819_v9, %v1819_v9  ;;  %v1900_v38 = vsel %vm1854_vm13, %v1819_v9, 0.0 }
 0x300   : > { %v1998_v24 = vadd.f32 %v1997_v45, %v1996_v11 }
 0x301   : > { %v1896_v17 = vsel %vm1854_vm13, %v1811_v23, 0.0  ;;  %v1947_v44 = vmul.f32 %v1811_v23, %v1811_v23  ;;  %2049 = vst.msk [vmem:[%s3689_s9 + $0xa8] sm:$0xff] %vm1854_vm13, %v1811_v23  ;;  %v2003_v40 = vsel %vm1854_vm13, %v1949_v34, 0.0 }
 0x302   : > { %v1897_v28 = vadd.f32 %v1896_v17, %v1895_v19 }
 0x303   : > { %v1999_v33 = vsel %vm1854_vm13, %v1947_v44, 0.0 }
 0x304   : > { %v1899_v61 = vadd.f32 %v1898_v18, %v1897_v28  ;;  %v2000_v22 = vadd.f32 %v1999_v33, %v1998_v24 }
 0x306   : > { %v2002_v43 = vadd.f32 %v2001_v6, %v2000_v22  ;;  %v1901_v37 = vadd.f32 %v1900_v38, %v1899_v61 }
 0x308   : > { %v2004_v60 = vadd.f32 %v2003_v40, %v2002_v43 }
 0x328   : > { %v2250_v36 = vpop.f32.mrf.mxu1 }
 0x329   : > { %v1832_v21 = vadd.f32 %v2250_v36, %v3684_v15 }
 0x32a   : > { %v1823_v3 = vpop.f32.mrf.mxu1 }
 0x32b   : > { %2054 = vst.msk [vmem:[%s3689_s9 + $0xd0] sm:$0xff] %vm1854_vm13, %v1832_v21  ;;  %v1824_v41 = vadd.f32 %v3684_v15, %v1823_v3  ;;  %v1952_v14 = vmul.f32 %v1832_v21, %v1832_v21  ;;  %v1906_v54 = vsel %vm1854_vm13, %v1832_v21, 0.0 }
 0x32c   : > { %v2251_v26 = vpop.f32.mrf.mxu1 }
 0x32d   : > { %2052 = vst.msk [vmem:[%s3689_s9 + $0xc0] sm:$0xff] %vm1854_vm13, %v1824_v41  ;;  %v1835_v35 = vadd.f32 %v2251_v26, %v3684_v15  ;;  %v1950_v20 = vmul.f32 %v1824_v41, %v1824_v41  ;;  %v1902_v57 = vsel %vm1854_vm13, %v1824_v41, 0.0  ;;  %v2009_v47 = vsel %vm1854_vm13, %v1952_v14, 0.0 }
 0x32e   : > { %v1826_v8 = vpop.f32.mrf.mxu1  ;;  %v1903_v59 = vadd.f32 %v1902_v57, %v1901_v37 }
 0x32f   : > { %2055 = vst.msk [vmem:[%s3689_s9 + $0xd8] sm:$0xff] %vm1854_vm13, %v1835_v35  ;;  %v1827_v13 = vadd.f32 %v3684_v15, %v1826_v8  ;;  %v2005_v46 = vsel %vm1854_vm13, %v1950_v20, 0.0  ;;  %v1953_v29 = vmul.f32 %v1835_v35, %v1835_v35  ;;  %v1908_v31 = vsel %vm1854_vm13, %v1835_v35, 0.0 }
 0x330   : > { %v2006_v48 = vadd.f32 %v2005_v46, %v2004_v60 }
 0x331   : > { %2053 = vst.msk [vmem:[%s3689_s9 + $0xc8] sm:$0xff] %vm1854_vm13, %v1827_v13  ;;  %v1951_v49 = vmul.f32 %v1827_v13, %v1827_v13  ;;  %v1904_v56 = vsel %vm1854_vm13, %v1827_v13, 0.0  ;;  %v2011_v12 = vsel %vm1854_vm13, %v1953_v29, 0.0 }
 0x332   : > { %v1905_v52 = vadd.f32 %v1904_v56, %v1903_v59 }
 0x333   : > { %v2007_v10 = vsel %vm1854_vm13, %v1951_v49, 0.0 }
 0x334   : > { %v2008_v50 = vadd.f32 %v2007_v10, %v2006_v48  ;;  %v1907_v4 = vadd.f32 %v1906_v54, %v1905_v52 }
 0x336   : > { %v2010_v62 = vadd.f32 %v2009_v47, %v2008_v50  ;;  %v1909_v51 = vadd.f32 %v1908_v31, %v1907_v4 }
 0x338   : > { %v2012_v1 = vadd.f32 %v2011_v12, %v2010_v62 }
 0x358   : > { %v2254_v58 = vpop.f32.mrf.mxu1 }
 0x359   : > { %v1848_v2 = vadd.f32 %v2254_v58, %v3684_v15 }
 0x35a   : > { %v1839_v25 = vpop.f32.mrf.mxu1 }
 0x35b   : > { %2058 = vst.msk [vmem:[%s3689_s9 + $0xf0] sm:$0xff] %vm1854_vm13, %v1848_v2  ;;  %v1840_v30 = vadd.f32 %v3684_v15, %v1839_v25  ;;  %v1956_v16 = vmul.f32 %v1848_v2, %v1848_v2  ;;  %v1914_v45 = vsel %vm1854_vm13, %v1848_v2, 0.0 }
 0x35c   : > { %v2255_v63 = vpop.f32.mrf.mxu1 }
 0x35d   : > { %v1910_v42 = vsel %vm1854_vm13, %v1840_v30, 0.0  ;;  %v1954_v32 = vmul.f32 %v1840_v30, %v1840_v30  ;;  %2056 = vst.msk [vmem:[%s3689_s9 + $0xe0] sm:$0xff] %vm1854_vm13, %v1840_v30  ;;  %v1851_v0 = vadd.f32 %v2255_v63, %v3684_v15 }
 0x35e   : > { %v1842_v11 = vpop.f32.mrf.mxu1  ;;  %v1911_v39 = vadd.f32 %v1910_v42, %v1909_v51 }
 0x35f   : > { %v2013_v5 = vsel %vm1854_vm13, %v1954_v32, 0.0  ;;  %2059 = vst.msk [vmem:[%s3689_s9 + $0xf8] sm:$0xff] %vm1854_vm13, %v1851_v0  ;;  %v1843_v27 = vadd.f32 %v3684_v15, %v1842_v11  ;;  %v1957_v23 = vmul.f32 %v1851_v0, %v1851_v0  ;;  %v2017_v15 = vsel %vm1854_vm13, %v1956_v16, 0.0 }
 0x360   : > { %v2014_v19 = vadd.f32 %v2013_v5, %v2012_v1  ;;  %v1916_v44 = vsel %vm1854_vm13, %v1851_v0, 0.0 }
 0x361   : > { %v1912_v7 = vsel %vm1854_vm13, %v1843_v27, 0.0  ;;  %v1955_v9 = vmul.f32 %v1843_v27, %v1843_v27  ;;  %2057 = vst.msk [vmem:[%s3689_s9 + $0xe8] sm:$0xff] %vm1854_vm13, %v1843_v27  ;;  %v2019_v34 = vsel %vm1854_vm13, %v1957_v23, 0.0 }
 0x362   : > { %v1913_v55 = vadd.f32 %v1912_v7, %v1911_v39 }
 0x363   : > { %v2015_v24 = vsel %vm1854_vm13, %v1955_v9, 0.0 }
 0x364   : > { %v1915_v53 = vadd.f32 %v1914_v45, %v1913_v55  ;;  %v2016_v17 = vadd.f32 %v2015_v24, %v2014_v19 }
 0x366   : > { %v1917_v28 = vadd.f32 %v1916_v44, %v1915_v53  ;;  %v2018_v18 = vadd.f32 %v2017_v15, %v2016_v17 }
 0x368   : > { %v1918_v33 = vrot.slane %v1917_v28, 4  ;;  %v2020_v61 = vadd.f32 %v2019_v34, %v2018_v18 }
 0x36a   : > { %v1919_v22 = vadd.f32 %v1918_v33, %v1917_v28  ;;  %v2021_v6 = vrot.slane %v2020_v61, 4 }
 0x36c   : > { %v1920_v38 = vrot.slane %v1919_v22, 2  ;;  %v2022_v43 = vadd.f32 %v2021_v6, %v2020_v61 }
 0x36e   : > { %v1921_v37 = vadd.f32 %v1920_v38, %v1919_v22  ;;  %v2023_v40 = vrot.slane %v2022_v43, 2 }
 0x370   : > { %v1922_v60 = vrot.slane %v1921_v37, 1  ;;  %v2024_v36 = vadd.f32 %v2023_v40, %v2022_v43 }
 0x372   : > { %v1923_v21 = vadd.f32 %v1922_v60, %v1921_v37  ;;  %v2025_v3 = vrot.slane %v2024_v36, 1 }
 0x374   : > { %1925 = vst.msk [vmem:[%s198_s12] sm:$0x1] %vm1924_vm14, %v1923_v21  ;;  %v2026_v41 = vadd.f32 %v2025_v3, %v2024_v36 }
 0x376   : > { %2027 = vst.msk [vmem:[%s198_s12 + $0x1] sm:$0x1] %vm1924_vm14, %v2026_v41 }
 0x377   : > { %2328 = shalt.err (!%p2325_p3)
}
 0x378   : > { %s2329_s5 = scalar_lea.hbm %s2080_s22, 32  ;;  %s2333_s8 = scalar_lea.hbm %s3951_s4, 64 }
 0x379   : > { %p2330_p4 = scmp.ne.s32.totalorder %s2080_s22, %s2329_s5  ;;  %p2334_p9 = scmp.lt.s32.totalorder %s2080_s22, %s3951_s4 }
 0x37a   : > { %p2335_p10 = scmp.lt.s32.totalorder %s2333_s8, %s2329_s5 }
 0x37b   : > { %p2331_p7 = pnand %p2330_p4, %p2449_p5 }
 0x37c   : > { %p2336_p11 = por %p2335_p10, %p2334_p9 }
 0x37d   : > { %p2332_p8 = pneg %p2331_p7 }
 0x37f   : > { %p2337_p12 = pnand %p2336_p11, %p2332_p8 }
 0x381   : > { %2340 = shalt.err (!%p2337_p12)
}
 0x382   : > { %2265 = dma.vmem_to_hbm [thread:$0]  (%p2449_p5), %s2083_s13, 32, %s2080_s22, %s2066_s23  }
 0x383 PF: > { %p2271_p13 = scmp.ge.s32.totalorder %s2375_s18, 2  ;;  %s2102_s10 = sand.u32 1, %s2363_s15  }
 0x384   : > { %s2103_s11 = scalar_lea.sflag [#allocation4], %s2102_s10 }
 0x385   : > { %p2268_p0 = pnand %p2271_p13, %p2453_p6 }
 0x387   : > { %p2269_p1 = pneg %p2268_p0 }
 0x389   : > { %2358 = dma.done.wait (%p2269_p1), %s2103_s11, 32  }
 0x38a   : > { %2360 = vsyncadd (%p2269_p1), %s2103_s11, 4294967264  ;;  %p15_p2 = scmp.ge.s32.totalorder %s2436_s21, 4   ;;  %s4086_s15 = smov %s2367_s16 }
 0x38b   : > { %s4087_s16 = smov %s2371_s17  ;;  %s4088_s17 = smov %s2447_s24 }
 0x38c   : > { %s4089_s18 = smov %s2436_s21  ;;  %17 = sbr.rel (!%p15_p2) target bundleno = 3 (0x3), region = 79 }
 0x391   :  { %2108 = vsyncpa [#allocation4], 1 }
 0x392   :  { %2110 = vsyncpa [#allocation4 + $0x1], 1 }

</bundles_post_ra>
